<compile_context>
chip_gen: v6e
topology: v6e:2x2x1
jax: 0.10.0
libtpu: 0.0.40
codegen_flags: <defaults>
</compile_context>

<pallas_src>
import math

import jax
import jax.numpy as jnp
from jax.experimental import pallas as pl
from jax.experimental.pallas import tpu as pltpu

LN_EPS = 1e-5
_INV_SQRT2 = 1.0 / math.sqrt(2.0)


def _gelu(x):
    # exact (erf-based) GELU, matching torch.nn.GELU() default.
    # If profiling shows the VALU slot saturating, jax.nn.gelu(approximate=True)
    # moves the transcendental to the EUP slot (slight deviation from torch).
    return 0.5 * x * (1.0 + jax.lax.erf(x * _INV_SQRT2))


# ----------------------------- Pallas kernel -----------------------------
def feedforward1_kernel(x_ref, ln_g_ref, ln_b_ref, w1_ref, b1_ref,
                        w2_ref, b2_ref, out_ref):
    x = x_ref[...].astype(jnp.float32)                            # (tm, D)

    # LayerNorm (stats in f32)
    mean = jnp.mean(x, axis=-1, keepdims=True)
    var = jnp.mean(jnp.square(x - mean), axis=-1, keepdims=True)
    normed = (x - mean) * jax.lax.rsqrt(var + LN_EPS)
    normed = normed * ln_g_ref[...].astype(jnp.float32) \
        + ln_b_ref[...].astype(jnp.float32)

    # Linear -> GELU -> Linear: bf16 operands into the MXU, f32 accumulation.
    h = jnp.dot(normed.astype(w1_ref.dtype), w1_ref[...],
                preferred_element_type=jnp.float32)
    h = _gelu(h + b1_ref[...].astype(jnp.float32))                # (tm, H)
    y = jnp.dot(h.astype(w2_ref.dtype), w2_ref[...],
                preferred_element_type=jnp.float32)
    y = y + b2_ref[...].astype(jnp.float32)                       # (tm, D)

    # Residual: re-read the pre-LN x from the resident VMEM input tile so the
    # f32 copy isn't held live across both matmuls.
    out_ref[...] = (y + x_ref[...].astype(jnp.float32)).astype(out_ref.dtype)


# ----------------------------- pallas_call wrapper -----------------------------
def _build_specs(tm, D, H, *, single_buffer_weights):
    const_kw = {}
    if single_buffer_weights:
        # Constant index_map -> one VMEM buffer is enough; double-buffering the
        # weights only burns VMEM.
        const_kw = dict(pipeline_mode=pl.Buffered(1))

    def const(shape):
        return pl.BlockSpec(shape, lambda i: (0, 0), **const_kw)

    in_specs = [
        pl.BlockSpec((tm, D), lambda i: (i, 0)),   # x tile (streamed, double-buffered)
        const((1, D)),                             # ln gamma (resident)
        const((1, D)),                             # ln beta  (resident)
        const((D, H)),                             # w1       (resident, bf16)
        const((1, H)),                             # b1       (resident, bf16)
        const((H, D)),                             # w2       (resident, bf16)
        const((1, D)),                             # b2       (resident, bf16)
    ]
    out_specs = pl.BlockSpec((tm, D), lambda i: (i, 0))
    return in_specs, out_specs


def feedforward1(x, params, *, block_tokens=1024):
    """FeedForward1 forward. x: (..., D) with arbitrary leading dims."""
    orig_shape = x.shape
    D = orig_shape[-1]
    M = math.prod(orig_shape[:-1])
    H = params["w1"].shape[1]
    xf = x.reshape(M, D)

    # Token tile: multiple of 8 sublanes; cap so there are >= 2 grid steps when
    # possible so the "parallel" axis can shard across both v7x TensorCores.
    two_tile_cap = max(8, ((M // 2) // 8) * 8)
    tm = max(8, (min(block_tokens, two_tile_cap) // 8) * 8)
    num_tiles = pl.cdiv(M, tm)   # ragged last block handled by Pallas masking

    # bf16 weights/biases for the MXU; LN params stay f32 (tiny, exact stats).
    ln_g = params["ln_g"].astype(jnp.float32)
    ln_b = params["ln_b"].astype(jnp.float32)
    w1 = params["w1"].astype(jnp.bfloat16)
    b1 = params["b1"].astype(jnp.bfloat16)
    w2 = params["w2"].astype(jnp.bfloat16)
    b2 = params["b2"].astype(jnp.bfloat16)

    itemsize = jnp.dtype(x.dtype).itemsize
    cost = pl.CostEstimate(
        flops=4 * M * D * H + 10 * M * D,                 # 2 matmuls + LN/elementwise
        transcendentals=M * H + M,                        # erf + rsqrt
        bytes_accessed=2 * M * D * itemsize + 2 * (D * H + H * D + 2 * D + H),
    )
    compiler_params = pltpu.CompilerParams(
        dimension_semantics=("parallel",),
        vmem_limit_bytes=48 * 1024 * 1024,                # above v5e's 16 MiB default
    )

    def run(single_buffer_weights):
        in_specs, out_specs = _build_specs(
            tm, D, H, single_buffer_weights=single_buffer_weights)
        return pl.pallas_call(
            feedforward1_kernel,
            out_shape=jax.ShapeDtypeStruct((M, D), x.dtype),
            grid=(num_tiles,),
            in_specs=in_specs,
            out_specs=out_specs,
            compiler_params=compiler_params,
            cost_estimate=cost,
        )(xf, ln_g, ln_b, w1, b1, w2, b2)

    try:
        out = run(single_buffer_weights=True)
    except Exception:
        # Fallback for JAX versions where pl.Buffered(1) isn't supported on
        # pallas_call BlockSpecs; only costs extra resident weight VMEM.
        out = run(single_buffer_weights=False)

    return out.reshape(orig_shape)


# ----------------------------- pure-JAX reference -----------------------------
def feedforward1_ref(x, params):
    xf = x.astype(jnp.float32)
    mean = jnp.mean(xf, axis=-1, keepdims=True)
    var = jnp.mean(jnp.square(xf - mean), axis=-1, keepdims=True)
    normed = (xf - mean) * jax.lax.rsqrt(var + LN_EPS) * params["ln_g"][0] \
        + params["ln_b"][0]
    h = _gelu(normed @ params["w1"] + params["b1"][0])
    y = h @ params["w2"] + params["b2"][0]
    return (y + xf).astype(x.dtype)


# ----------------------------- main -----------------------------
if __name__ == "__main__":
    # 2*5*13 = 130 tokens -> 3 token tiles of 64 with a ragged last block,
    # exercising the multi-tile pipeline and the no-pad masked-tail path.
    B, L, N = 2, 5, 13
    DIM, HIDDEN = 128, 256

    key = jax.random.PRNGKey(0)
    kx, kg, kb, kw1, kb1, kw2, kb2 = jax.random.split(key, 7)

    x = jax.random.normal(kx, (B, L, N, DIM), jnp.float32)
    params = {
        "ln_g": 1.0 + 0.1 * jax.random.normal(kg, (1, DIM), jnp.float32),
        "ln_b": 0.02 * jax.random.normal(kb, (1, DIM), jnp.float32),
        "w1": jax.random.normal(kw1, (DIM, HIDDEN), jnp.float32) * DIM ** -0.5,
        "b1": 0.02 * jax.random.normal(kb1, (1, HIDDEN), jnp.float32),
        "w2": jax.random.normal(kw2, (HIDDEN, DIM), jnp.float32) * HIDDEN ** -0.5,
        "b2": 0.02 * jax.random.normal(kb2, (1, DIM), jnp.float32),
    }

    out = jax.block_until_ready(feedforward1(x, params))
    ref = feedforward1_ref(x, params)

    assert out.shape == x.shape
    max_diff = float(jnp.max(jnp.abs(out - ref)))
    # bf16 MXU operands vs the f32 reference -> loosened tolerance.
    assert jnp.allclose(out, ref, rtol=5e-2, atol=5e-2), \
        f"max abs diff = {max_diff}"

    print("KERNEL_OK")
</pallas_src>

<mosaic_0001>
module attributes {stable_mosaic.version = 11 : i64} {
  func.func @feedforward1_kernel(%arg0: i32, %arg1: memref<64x128xf32, #tpu.memory_space<vmem>>, %arg2: memref<1x128xf32, #tpu.memory_space<vmem>>, %arg3: memref<1x128xf32, #tpu.memory_space<vmem>>, %arg4: memref<128x256xbf16, #tpu.memory_space<vmem>>, %arg5: memref<1x256xbf16, #tpu.memory_space<vmem>>, %arg6: memref<256x128xbf16, #tpu.memory_space<vmem>>, %arg7: memref<1x128xbf16, #tpu.memory_space<vmem>>, %arg8: memref<64x128xf32, #tpu.memory_space<vmem>>) attributes {dimension_semantics = [#tpu.dimension_semantics<parallel>], iteration_bounds = array<i64: 3>, scalar_prefetch = 0 : i64, scratch_operands = 0 : i64, tpu.core_type = #tpu.core_type<tc>, window_params = [{transform_indices = @transform_0, window_bounds = array<i64: 64, 128>}, {pipeline_mode = #tpu.pipeline_mode<synchronous>, transform_indices = @transform_1, window_bounds = array<i64: 1, 128>}, {pipeline_mode = #tpu.pipeline_mode<synchronous>, transform_indices = @transform_2, window_bounds = array<i64: 1, 128>}, {pipeline_mode = #tpu.pipeline_mode<synchronous>, transform_indices = @transform_3, window_bounds = array<i64: 128, 256>}, {pipeline_mode = #tpu.pipeline_mode<synchronous>, transform_indices = @transform_4, window_bounds = array<i64: 1, 256>}, {pipeline_mode = #tpu.pipeline_mode<synchronous>, transform_indices = @transform_5, window_bounds = array<i64: 256, 128>}, {pipeline_mode = #tpu.pipeline_mode<synchronous>, transform_indices = @transform_6, window_bounds = array<i64: 1, 128>}, {transform_indices = @transform_7, window_bounds = array<i64: 64, 128>}]} {
    %c0 = arith.constant 0 : index
    %c0_0 = arith.constant 0 : index
    %0 = vector.load %arg1[%c0, %c0_0] : memref<64x128xf32, #tpu.memory_space<vmem>>, vector<64x128xf32>
    %cst = arith.constant dense<0.000000e+00> : vector<64xf32>
    %1 = vector.multi_reduction <add>, %0, %cst [1] : vector<64x128xf32> to vector<64xf32>
    %2 = vector.shape_cast %1 : vector<64xf32> to vector<64x1xf32>
    %cst_1 = arith.constant 1.280000e+02 : f32
    %3 = vector.broadcast %cst_1 : f32 to vector<64x1xf32>
    %4 = arith.divf %2, %3 : vector<64x1xf32>
    %5 = vector.broadcast %4 : vector<64x1xf32> to vector<64x128xf32>
    %6 = arith.subf %0, %5 : vector<64x128xf32>
    %7 = arith.mulf %6, %6 : vector<64x128xf32>
    %cst_2 = arith.constant dense<0.000000e+00> : vector<64xf32>
    %8 = vector.multi_reduction <add>, %7, %cst_2 [1] : vector<64x128xf32> to vector<64xf32>
    %9 = vector.shape_cast %8 : vector<64xf32> to vector<64x1xf32>
    %cst_3 = arith.constant 1.280000e+02 : f32
    %10 = vector.broadcast %cst_3 : f32 to vector<64x1xf32>
    %11 = arith.divf %9, %10 : vector<64x1xf32>
    %12 = vector.broadcast %4 : vector<64x1xf32> to vector<64x128xf32>
    %13 = arith.subf %0, %12 : vector<64x128xf32>
    %cst_4 = arith.constant 9.99999974E-6 : f32
    %14 = vector.broadcast %cst_4 : f32 to vector<64x1xf32>
    %15 = arith.addf %11, %14 : vector<64x1xf32>
    %16 = math.rsqrt %15 : vector<64x1xf32>
    %17 = vector.broadcast %16 : vector<64x1xf32> to vector<64x128xf32>
    %18 = arith.mulf %13, %17 : vector<64x128xf32>
    %c0_5 = arith.constant 0 : index
    %c0_6 = arith.constant 0 : index
    %19 = vector.load %arg2[%c0_5, %c0_6] : memref<1x128xf32, #tpu.memory_space<vmem>>, vector<1x128xf32>
    %20 = vector.broadcast %19 : vector<1x128xf32> to vector<64x128xf32>
    %21 = arith.mulf %18, %20 : vector<64x128xf32>
    %c0_7 = arith.constant 0 : index
    %c0_8 = arith.constant 0 : index
    %22 = vector.load %arg3[%c0_7, %c0_8] : memref<1x128xf32, #tpu.memory_space<vmem>>, vector<1x128xf32>
    %23 = vector.broadcast %22 : vector<1x128xf32> to vector<64x128xf32>
    %24 = arith.addf %21, %23 : vector<64x128xf32>
    %25 = arith.truncf %24 : vector<64x128xf32> to vector<64x128xbf16>
    %c0_9 = arith.constant 0 : index
    %c0_10 = arith.constant 0 : index
    %26 = vector.load %arg4[%c0_9, %c0_10] : memref<128x256xbf16, #tpu.memory_space<vmem>>, vector<128x256xbf16>
    %cst_11 = arith.constant dense<0.000000e+00> : vector<64x256xf32>
    %27 = tpu.matmul %25, %26, %cst_11 {dimension_numbers = #tpu.dot_dimension_numbers<[1], [0], [0], [1], [0, 0, 1, 1], [], []>} : vector<64x128xbf16>, vector<128x256xbf16>, vector<64x256xf32> -> vector<64x256xf32>
    %c0_12 = arith.constant 0 : index
    %c0_13 = arith.constant 0 : index
    %28 = vector.load %arg5[%c0_12, %c0_13] : memref<1x256xbf16, #tpu.memory_space<vmem>>, vector<1x256xbf16>
    %29 = arith.extf %28 : vector<1x256xbf16> to vector<1x256xf32>
    %30 = vector.broadcast %29 : vector<1x256xf32> to vector<64x256xf32>
    %31 = arith.addf %27, %30 : vector<64x256xf32>
    %cst_14 = arith.constant 5.000000e-01 : f32
    %32 = vector.broadcast %cst_14 : f32 to vector<64x256xf32>
    %33 = arith.mulf %32, %31 : vector<64x256xf32>
    %cst_15 = arith.constant 0.707106769 : f32
    %34 = vector.broadcast %cst_15 : f32 to vector<64x256xf32>
    %35 = arith.mulf %31, %34 : vector<64x256xf32>
    %36 = math.erf %35 : vector<64x256xf32>
    %cst_16 = arith.constant 1.000000e+00 : f32
    %37 = vector.broadcast %cst_16 : f32 to vector<64x256xf32>
    %38 = arith.addf %37, %36 : vector<64x256xf32>
    %39 = arith.mulf %33, %38 : vector<64x256xf32>
    %40 = arith.truncf %39 : vector<64x256xf32> to vector<64x256xbf16>
    %c0_17 = arith.constant 0 : index
    %c0_18 = arith.constant 0 : index
    %41 = vector.load %arg6[%c0_17, %c0_18] : memref<256x128xbf16, #tpu.memory_space<vmem>>, vector<256x128xbf16>
    %cst_19 = arith.constant dense<0.000000e+00> : vector<64x128xf32>
    %42 = tpu.matmul %40, %41, %cst_19 {dimension_numbers = #tpu.dot_dimension_numbers<[1], [0], [0], [1], [0, 0, 1, 1], [], []>} : vector<64x256xbf16>, vector<256x128xbf16>, vector<64x128xf32> -> vector<64x128xf32>
    %c0_20 = arith.constant 0 : index
    %c0_21 = arith.constant 0 : index
    %43 = vector.load %arg7[%c0_20, %c0_21] : memref<1x128xbf16, #tpu.memory_space<vmem>>, vector<1x128xbf16>
    %44 = arith.extf %43 : vector<1x128xbf16> to vector<1x128xf32>
    %45 = vector.broadcast %44 : vector<1x128xf32> to vector<64x128xf32>
    %46 = arith.addf %42, %45 : vector<64x128xf32>
    %c0_22 = arith.constant 0 : index
    %c0_23 = arith.constant 0 : index
    %47 = vector.load %arg1[%c0_22, %c0_23] : memref<64x128xf32, #tpu.memory_space<vmem>>, vector<64x128xf32>
    %48 = arith.addf %46, %47 : vector<64x128xf32>
    %c0_24 = arith.constant 0 : index
    %c0_25 = arith.constant 0 : index
    %49 = vector.load %arg8[%c0_24, %c0_25] : memref<64x128xf32, #tpu.memory_space<vmem>>, vector<64x128xf32>
    tpu.vector_store %arg8[%c0_24, %c0_25], %48 {strides = array<i32>} : memref<64x128xf32, #tpu.memory_space<vmem>>, vector<64x128xf32>,
    return
  }
  func.func @transform_0(%arg0: i32) -> (i32, i32) {
    %c0_i32 = arith.constant 0 : i32
    %c0_i32_0 = arith.constant 0 : i32
    return %arg0, %c0_i32 : i32, i32
  }
  func.func @transform_1(%arg0: i32) -> (i32, i32) {
    %c0_i32 = arith.constant 0 : i32
    %c0_i32_0 = arith.constant 0 : i32
    %c0_i32_1 = arith.constant 0 : i32
    return %c0_i32, %c0_i32_0 : i32, i32
  }
  func.func @transform_2(%arg0: i32) -> (i32, i32) {
    %c0_i32 = arith.constant 0 : i32
    %c0_i32_0 = arith.constant 0 : i32
    %c0_i32_1 = arith.constant 0 : i32
    return %c0_i32, %c0_i32_0 : i32, i32
  }
  func.func @transform_3(%arg0: i32) -> (i32, i32) {
    %c0_i32 = arith.constant 0 : i32
    %c0_i32_0 = arith.constant 0 : i32
    %c0_i32_1 = arith.constant 0 : i32
    return %c0_i32, %c0_i32_0 : i32, i32
  }
  func.func @transform_4(%arg0: i32) -> (i32, i32) {
    %c0_i32 = arith.constant 0 : i32
    %c0_i32_0 = arith.constant 0 : i32
    %c0_i32_1 = arith.constant 0 : i32
    return %c0_i32, %c0_i32_0 : i32, i32
  }
  func.func @transform_5(%arg0: i32) -> (i32, i32) {
    %c0_i32 = arith.constant 0 : i32
    %c0_i32_0 = arith.constant 0 : i32
    %c0_i32_1 = arith.constant 0 : i32
    return %c0_i32, %c0_i32_0 : i32, i32
  }
  func.func @transform_6(%arg0: i32) -> (i32, i32) {
    %c0_i32 = arith.constant 0 : i32
    %c0_i32_0 = arith.constant 0 : i32
    %c0_i32_1 = arith.constant 0 : i32
    return %c0_i32, %c0_i32_0 : i32, i32
  }
  func.func @transform_7(%arg0: i32) -> (i32, i32) {
    %c0_i32 = arith.constant 0 : i32
    %c0_i32_0 = arith.constant 0 : i32
    return %arg0, %c0_i32 : i32, i32
  }
}

module attributes {stable_mosaic.version = 11 : i64} {
  func.func @feedforward1_kernel(%arg0: i32, %arg1: memref<64x128xf32, #tpu.memory_space<vmem>>, %arg2: memref<1x128xf32, #tpu.memory_space<vmem>>, %arg3: memref<1x128xf32, #tpu.memory_space<vmem>>, %arg4: memref<128x256xbf16, #tpu.memory_space<vmem>>, %arg5: memref<1x256xbf16, #tpu.memory_space<vmem>>, %arg6: memref<256x128xbf16, #tpu.memory_space<vmem>>, %arg7: memref<1x128xbf16, #tpu.memory_space<vmem>>, %arg8: memref<64x128xf32, #tpu.memory_space<vmem>>) attributes {dimension_semantics = [#tpu.dimension_semantics<parallel>], iteration_bounds = array<i64: 3>, scalar_prefetch = 0 : i64, scratch_operands = 0 : i64, tpu.core_type = #tpu.core_type<tc>, window_params = [{transform_indices = @transform_0, window_bounds = array<i64: 64, 128>}, {pipeline_mode = #tpu.pipeline_mode<synchronous>, transform_indices = @transform_1, window_bounds = array<i64: 1, 128>}, {pipeline_mode = #tpu.pipeline_mode<synchronous>, transform_indices = @transform_2, window_bounds = array<i64: 1, 128>}, {pipeline_mode = #tpu.pipeline_mode<synchronous>, transform_indices = @transform_3, window_bounds = array<i64: 128, 256>}, {pipeline_mode = #tpu.pipeline_mode<synchronous>, transform_indices = @transform_4, window_bounds = array<i64: 1, 256>}, {pipeline_mode = #tpu.pipeline_mode<synchronous>, transform_indices = @transform_5, window_bounds = array<i64: 256, 128>}, {pipeline_mode = #tpu.pipeline_mode<synchronous>, transform_indices = @transform_6, window_bounds = array<i64: 1, 128>}, {transform_indices = @transform_7, window_bounds = array<i64: 64, 128>}]} {
    %c0 = arith.constant 0 : index
    %c0_0 = arith.constant 0 : index
    %0 = vector.load %arg1[%c0, %c0_0] : memref<64x128xf32, #tpu.memory_space<vmem>>, vector<64x128xf32>
    %cst = arith.constant dense<0.000000e+00> : vector<64xf32>
    %1 = vector.multi_reduction <add>, %0, %cst [1] : vector<64x128xf32> to vector<64xf32>
    %2 = vector.shape_cast %1 : vector<64xf32> to vector<64x1xf32>
    %cst_1 = arith.constant 1.280000e+02 : f32
    %3 = vector.broadcast %cst_1 : f32 to vector<64x1xf32>
    %4 = arith.divf %2, %3 : vector<64x1xf32>
    %5 = vector.broadcast %4 : vector<64x1xf32> to vector<64x128xf32>
    %6 = arith.subf %0, %5 : vector<64x128xf32>
    %7 = arith.mulf %6, %6 : vector<64x128xf32>
    %cst_2 = arith.constant dense<0.000000e+00> : vector<64xf32>
    %8 = vector.multi_reduction <add>, %7, %cst_2 [1] : vector<64x128xf32> to vector<64xf32>
    %9 = vector.shape_cast %8 : vector<64xf32> to vector<64x1xf32>
    %cst_3 = arith.constant 1.280000e+02 : f32
    %10 = vector.broadcast %cst_3 : f32 to vector<64x1xf32>
    %11 = arith.divf %9, %10 : vector<64x1xf32>
    %12 = vector.broadcast %4 : vector<64x1xf32> to vector<64x128xf32>
    %13 = arith.subf %0, %12 : vector<64x128xf32>
    %cst_4 = arith.constant 9.99999974E-6 : f32
    %14 = vector.broadcast %cst_4 : f32 to vector<64x1xf32>
    %15 = arith.addf %11, %14 : vector<64x1xf32>
    %16 = math.rsqrt %15 : vector<64x1xf32>
    %17 = vector.broadcast %16 : vector<64x1xf32> to vector<64x128xf32>
    %18 = arith.mulf %13, %17 : vector<64x128xf32>
    %c0_5 = arith.constant 0 : index
    %c0_6 = arith.constant 0 : index
    %19 = vector.load %arg2[%c0_5, %c0_6] : memref<1x128xf32, #tpu.memory_space<vmem>>, vector<1x128xf32>
    %20 = vector.broadcast %19 : vector<1x128xf32> to vector<64x128xf32>
    %21 = arith.mulf %18, %20 : vector<64x128xf32>
    %c0_7 = arith.constant 0 : index
    %c0_8 = arith.constant 0 : index
    %22 = vector.load %arg3[%c0_7, %c0_8] : memref<1x128xf32, #tpu.memory_space<vmem>>, vector<1x128xf32>
    %23 = vector.broadcast %22 : vector<1x128xf32> to vector<64x128xf32>
    %24 = arith.addf %21, %23 : vector<64x128xf32>
    %25 = arith.truncf %24 : vector<64x128xf32> to vector<64x128xbf16>
    %c0_9 = arith.constant 0 : index
    %c0_10 = arith.constant 0 : index
    %26 = vector.load %arg4[%c0_9, %c0_10] : memref<128x256xbf16, #tpu.memory_space<vmem>>, vector<128x256xbf16>
    %cst_11 = arith.constant dense<0.000000e+00> : vector<64x256xf32>
    %27 = tpu.matmul %25, %26, %cst_11 {dimension_numbers = #tpu.dot_dimension_numbers<[1], [0], [0], [1], [0, 0, 1, 1], [], []>} : vector<64x128xbf16>, vector<128x256xbf16>, vector<64x256xf32> -> vector<64x256xf32>
    %c0_12 = arith.constant 0 : index
    %c0_13 = arith.constant 0 : index
    %28 = vector.load %arg5[%c0_12, %c0_13] : memref<1x256xbf16, #tpu.memory_space<vmem>>, vector<1x256xbf16>
    %29 = arith.extf %28 : vector<1x256xbf16> to vector<1x256xf32>
    %30 = vector.broadcast %29 : vector<1x256xf32> to vector<64x256xf32>
    %31 = arith.addf %27, %30 : vector<64x256xf32>
    %cst_14 = arith.constant 5.000000e-01 : f32
    %32 = vector.broadcast %cst_14 : f32 to vector<64x256xf32>
    %33 = arith.mulf %32, %31 : vector<64x256xf32>
    %cst_15 = arith.constant 0.707106769 : f32
    %34 = vector.broadcast %cst_15 : f32 to vector<64x256xf32>
    %35 = arith.mulf %31, %34 : vector<64x256xf32>
    %36 = math.erf %35 : vector<64x256xf32>
    %cst_16 = arith.constant 1.000000e+00 : f32
    %37 = vector.broadcast %cst_16 : f32 to vector<64x256xf32>
    %38 = arith.addf %37, %36 : vector<64x256xf32>
    %39 = arith.mulf %33, %38 : vector<64x256xf32>
    %40 = arith.truncf %39 : vector<64x256xf32> to vector<64x256xbf16>
    %c0_17 = arith.constant 0 : index
    %c0_18 = arith.constant 0 : index
    %41 = vector.load %arg6[%c0_17, %c0_18] : memref<256x128xbf16, #tpu.memory_space<vmem>>, vector<256x128xbf16>
    %cst_19 = arith.constant dense<0.000000e+00> : vector<64x128xf32>
    %42 = tpu.matmul %40, %41, %cst_19 {dimension_numbers = #tpu.dot_dimension_numbers<[1], [0], [0], [1], [0, 0, 1, 1], [], []>} : vector<64x256xbf16>, vector<256x128xbf16>, vector<64x128xf32> -> vector<64x128xf32>
    %c0_20 = arith.constant 0 : index
    %c0_21 = arith.constant 0 : index
    %43 = vector.load %arg7[%c0_20, %c0_21] : memref<1x128xbf16, #tpu.memory_space<vmem>>, vector<1x128xbf16>
    %44 = arith.extf %43 : vector<1x128xbf16> to vector<1x128xf32>
    %45 = vector.broadcast %44 : vector<1x128xf32> to vector<64x128xf32>
    %46 = arith.addf %42, %45 : vector<64x128xf32>
    %c0_22 = arith.constant 0 : index
    %c0_23 = arith.constant 0 : index
    %47 = vector.load %arg1[%c0_22, %c0_23] : memref<64x128xf32, #tpu.memory_space<vmem>>, vector<64x128xf32>
    %48 = arith.addf %46, %47 : vector<64x128xf32>
    %c0_24 = arith.constant 0 : index
    %c0_25 = arith.constant 0 : index
    %49 = vector.load %arg8[%c0_24, %c0_25] : memref<64x128xf32, #tpu.memory_space<vmem>>, vector<64x128xf32>
    tpu.vector_store %arg8[%c0_24, %c0_25], %48 {strides = array<i32>} : memref<64x128xf32, #tpu.memory_space<vmem>>, vector<64x128xf32>,
    return
  }
  func.func @transform_0(%arg0: i32) -> (i32, i32) {
    %c0_i32 = arith.constant 0 : i32
    %c0_i32_0 = arith.constant 0 : i32
    return %arg0, %c0_i32 : i32, i32
  }
  func.func @transform_1(%arg0: i32) -> (i32, i32) {
    %c0_i32 = arith.constant 0 : i32
    %c0_i32_0 = arith.constant 0 : i32
    %c0_i32_1 = arith.constant 0 : i32
    return %c0_i32, %c0_i32_0 : i32, i32
  }
  func.func @transform_2(%arg0: i32) -> (i32, i32) {
    %c0_i32 = arith.constant 0 : i32
    %c0_i32_0 = arith.constant 0 : i32
    %c0_i32_1 = arith.constant 0 : i32
    return %c0_i32, %c0_i32_0 : i32, i32
  }
  func.func @transform_3(%arg0: i32) -> (i32, i32) {
    %c0_i32 = arith.constant 0 : i32
    %c0_i32_0 = arith.constant 0 : i32
    %c0_i32_1 = arith.constant 0 : i32
    return %c0_i32, %c0_i32_0 : i32, i32
  }
  func.func @transform_4(%arg0: i32) -> (i32, i32) {
    %c0_i32 = arith.constant 0 : i32
    %c0_i32_0 = arith.constant 0 : i32
    %c0_i32_1 = arith.constant 0 : i32
    return %c0_i32, %c0_i32_0 : i32, i32
  }
  func.func @transform_5(%arg0: i32) -> (i32, i32) {
    %c0_i32 = arith.constant 0 : i32
    %c0_i32_0 = arith.constant 0 : i32
    %c0_i32_1 = arith.constant 0 : i32
    return %c0_i32, %c0_i32_0 : i32, i32
  }
  func.func @transform_6(%arg0: i32) -> (i32, i32) {
    %c0_i32 = arith.constant 0 : i32
    %c0_i32_0 = arith.constant 0 : i32
    %c0_i32_1 = arith.constant 0 : i32
    return %c0_i32, %c0_i32_0 : i32, i32
  }
  func.func @transform_7(%arg0: i32) -> (i32, i32) {
    %c0_i32 = arith.constant 0 : i32
    %c0_i32_0 = arith.constant 0 : i32
    return %arg0, %c0_i32 : i32, i32
  }
}

</mosaic_0001>

<bundles_post_ra>
// kernel: tpu_custom_call.1
= control target key start
LH: loop header
LB: loop body
LE: loop exit
PB: predicated region body
PF: predicated region fallthrough
CT: control target
= control target key end

     0   :  { %s1992_s0 = inlined_call_operand.hbm [shape: f32[130,128], index: 0, kind: input, shape index: {}]   ;;  %s1993_s1 = inlined_call_operand.vmem [shape: f32[1,128], index: 1, kind: input, shape index: {}]   ;;  %s1994_s2 = inlined_call_operand.hbm [shape: f32[1,128], index: 2, kind: input, shape index: {}]   ;;  %s1995_s3 = inlined_call_operand.hbm [shape: bf16[128,256], index: 3, kind: input, shape index: {}]   ;;  %s1996_s4 = inlined_call_operand.vmem [shape: bf16[1,256], index: 4, kind: input, shape index: {}]   ;;  %s1997_s5 = inlined_call_operand.hbm [shape: bf16[256,128], index: 5, kind: input, shape index: {}]   ;;  %s1998_s6 = inlined_call_operand.vmem [shape: bf16[1,128], index: 6, kind: input, shape index: {}]   ;;  %s1999_s7 = inlined_call_operand.hbm [shape: f32[130,128], index: 7, kind: output, shape index: {}]  }
   0x1   :  { %2003 = sst [smem:[#allocation15_spill]] %s1994_s2 }
   0x2   :  { %2004 = sst [smem:[#allocation16_spill]] %s1995_s3 }
   0x3   :  { %12 = vsyncpa [#allocation3], 0 }
   0x4   :  { %14 = vsyncpa [#allocation3 + $0x1], 0 }
   0x5   :  { %15 = vsyncpa [#allocation6], 0 }
   0x6   :  { %16 = vsyncpa [#allocation9], 0 }
   0x7   :  { %17 = vsyncpa [#allocation4], 0 }
   0x8   :  { %19 = vsyncpa [#allocation4 + $0x1], 0  ;;  %s1605_s24 = smov 0   ;;  %s1607_s25 = smov 0  }
   0x9   :  { %s1609_s26 = smov 0   ;;  %s1611_s27 = smov 0  }
   0xa LB: > { %s1626_s28 = sadd.s32 4294967295, %s1549_s27   ;;  %s1102_s29 = sadd.s32 4294967294, %s1549_s27   ;;  %s1549_s27 = sphi %s1611_s27, %s2025_s27   ;;  %s1545_s26 = sphi %s1609_s26, %s2024_s26   ;;  %s1541_s25 = sphi %s1607_s25, %s2023_s25   ;;  %s1537_s24 = sphi %s1605_s24, %s2022_s24  }
   0xb   : > { %s1630_s30 = sadd.s32 1, %s1549_s27   ;;  %s32_s8 = sadd.s32 1, %s1545_s26 }
   0xc   : > { %s29_s9 = ssub.s32 %s1549_s27, %s1630_s30  ;;  %p39_p0 = scmp.ne.s32.totalorder %s1545_s26, %s1541_s25 }
   0xd   : > { %p30_p1 = scmp.eq.s32.totalorder %s29_s9, 0  ;;  %p40_p2 = scmp.eq.s32.totalorder %s1549_s27, 0 }
   0xe   : > { %p45_p3 = scmp.ne.s32.totalorder %s1541_s25, %s1537_s24  ;;  %p2000_p4 = scmp.eq.s32.totalorder %s1626_s28, 0 }
   0xf   : > { %s1642_s10 = scalar_select %p30_p1, %s1545_s26, %s32_s8  }
  0x10   : > { %p1644_p5 = por %p40_p2, %p39_p0  ;;  %p1650_p6 = por %p2000_p4, %p45_p3 }
  0x11   : > { %p195_p7 = scmp.eq.s32.totalorder %s1626_s28, 2  ;;  %p201_p8 = scmp.eq.s32.totalorder %s1102_s29, 2 }
  0x12   : > { %s2005_s11 = scalar_select %p1644_p5, 1, 0 }
  0x13   : > { %s2006_s12 = scalar_select %p1650_p6, 1, 0 }
  0x14   : > { %p1103_p9 = scmp.ge.s32.totalorder %s1549_s27, 1  ;;  %p208_p10 = scmp.lt.s32.totalorder %s1549_s27, 4 }
  0x15   : > { %p1657_p11 = por %p195_p7, %p39_p0  ;;  %p1661_p12 = por %p201_p8, %p45_p3 }
  0x16   : > { %p1665_p13 = pnand %p1103_p9, %p208_p10  ;;  %s1551_s16 = smov [#allocation5]  }
  0x17   : > { %s2007_s13 = scalar_select %p1657_p11, 1, 0 }
  0x18   : > { %s2008_s14 = scalar_select %p1661_p12, 1, 0 }
  0x19   : > { %s2009_s15 = scalar_select %p1665_p13, 1, 0 }
  0x1a   : > { %p1220_p1 = pneg %p1665_p13  ;;  %s224_s17 = sshll.u32 %s1551_s16, 4  ;;  %s225_s17 = int_to_ptr.vmem [resolvable:$true] %s224_s17 }
  0x1b   : > { %s1552_s18 = smov [#allocation7]   ;;  %s1384_s21 = scalar_lea.vmem %s225_s17, 16 }
  0x1c   : > { %s234_s19 = sshll.u32 %s1552_s18, 4  ;;  %p1673_p0 = pnand %p1220_p1, %p2000_p4  ;;  %s235_s19 = int_to_ptr.vmem [resolvable:$true] %s234_s19 }
  0x1d   : > { %p1385_p3 = scmp.ne.s32.totalorder %s225_s17, %s1384_s21  ;;  %s1391_s22 = scalar_lea.vmem %s225_s17, 32 }
  0x1e   : > { %p1375_p2 = pneg %p1673_p0  ;;  %p1392_p9 = scmp.lt.s32.totalorder %s225_s17, %s225_s17 }
  0x1f   : > { %p1393_p10 = scmp.lt.s32.totalorder %s1391_s22, %s1384_s21 }
  0x20   : > { %p1387_p7 = pnand %p1385_p3, %p1375_p2 }
  0x21   : > { %p1394_p12 = por %p1393_p10, %p1392_p9 }
  0x22   : > { %p1388_p8 = pneg %p1387_p7 }
  0x24   : > { %p1395_p11 = pnand %p1394_p12, %p1388_p8 }
  0x26   : > { %1398 = shalt.err (!%p1395_p11)
}
  0x27   : > { %s2011_s2 = sld [smem:[#allocation15_spill]]  ;;  %s1410_s8 = scalar_lea.vmem %s235_s19, 2048 }
  0x28   : > { %p1411_p1 = scmp.ne.s32.totalorder %s235_s19, %s1410_s8  ;;  %p1418_p7 = scmp.lt.s32.totalorder %s235_s19, %s235_s19 }
  0x29   : > { %p1419_p6 = scmp.lt.s32.totalorder %s1410_s8, %s1410_s8 }
  0x2a   : > { %p1413_p4 = pnand %p1411_p1, %p1375_p2 }
  0x2b   : > { %p1420_p13 = por %p1419_p6, %p1418_p7 }
  0x2c   : > { %p1414_p3 = pneg %p1413_p4 }
  0x2d   : > { %1223 = dma.hbm_to_vmem [thread:$0]  (!%p1673_p0), %s2011_s2, 16, %s225_s17, [#allocation6]  }
  0x2e   : > { %p1421_p5 = pnand %p1420_p13, %p1414_p3 }
  0x30   : > { %1424 = shalt.err (!%p1421_p5)
}
  0x31   : > { %s1553_s9 = smov 128   ;;  %s1554_s16 = smov 8  }
  0x32   : > { %s2012_s3 = sld [smem:[#allocation16_spill]]  ;;  %s1555_s17 = smov [#allocation8]  }
  0x33   : > { %s250_s22 = sshll.u32 %s1555_s17, 4  ;;  %s251_s22 = int_to_ptr.vmem [resolvable:$true] %s250_s22 }
  0x34   : > { %s1436_s23 = scalar_lea.vmem %s251_s22, 2048  ;;  %p1444_p12 = scmp.lt.s32.totalorder %s251_s22, %s251_s22 }
  0x35   : > { %p1437_p11 = scmp.ne.s32.totalorder %s251_s22, %s1436_s23  ;;  %p1445_p5 = scmp.lt.s32.totalorder %s1436_s23, %s1436_s23 }
  0x37   : > { %p1439_p4 = pnand %p1437_p11, %p1375_p2  ;;  %p1446_p13 = por %p1445_p5, %p1444_p12 }
  0x38   : > { %1226 = dma.hbm_to_vmem [thread:$0]  (!%p1673_p0), %s2012_s3, 2048, %s235_s19, [#allocation6], %s1553_s9, %s1553_s9, %s1554_s16  }
  0x39   : > { %p1440_p6 = pneg %p1439_p4 }
  0x3b   : > { %p1447_p8 = pnand %p1446_p13, %p1440_p6 }
  0x3d   : > { %1450 = shalt.err (!%p1447_p8)
}
  0x3e   : > { %s1556_s29 = smov 64   ;;  %s1557_s8 = smov 4  }
  0x3f   : > { %1229 = dma.hbm_to_vmem [thread:$0]  (!%p1673_p0), %s1997_s5, 2048, %s251_s22, [#allocation9], %s1556_s29, %s1556_s29, %s1557_s8  }
  0x40   : > { %p1107_p9 = scmp.ge.s32.totalorder %s1549_s27, 3 }
  0x41   : > { %p2013_p10 = scmp.ne.s32.totalorder (!%p1107_p9), %s2005_s11, 0 }
  0x42   : > { %263 = sbr.rel (%p1107_p9) target bundleno = 103 (0x67), region = 40 }
  0x47   : > { %266 = sbr.rel (!%p2013_p10) target bundleno = 103 (0x67), region = 44  ;;  %s267_s9 = sand.u32 (%p2013_p10), 1, %s1545_s26  }
  0x48   : > { %s1109_s16 = sshll.u32 (%p2013_p10), %s1549_s27, 3  ;;  %s1108_s21 = sshll.u32 (%p2013_p10), %s267_s9, 6 }
  0x49   : > { %s273_s17 = ssub.s32 (%p2013_p10), 17, %s1109_s16  ;;  %s1711_s18 = scalar_lea.sflag (%p2013_p10), [#allocation3], %s267_s9 }
  0x4a   : > { %p274_p2 = scmp.lt.s32.totalorder (%p2013_p10), %s273_s17, 8  ;;  %s271_s22 = scalar_lea.vmem (%p2013_p10), [#allocation2], %s1108_s21 }
  0x4c   : > { %s2027_s17 = smov (!%p274_p2, %s273_s17), 8 }
  0x4d   : > { %s1708_s23 = sshll.u32 %s2027_s17, 7 }
  0x4e   : > { %s278_s20 = ssub.s32 1024, %s1708_s23 }
  0x4f   : > { %279 = vsyncadd %s1711_s18, %s278_s20  ;;  %p1111_p0 = scmp.ne.s32.totalorder %s1708_s23, 0  ;;  %s1164_s11 = sshll.u32 %s1549_s27, 10 }
  0x50   : > { %s1719_s19 = scalar_lea.hbm %s1992_s0, %s1164_s11  ;;  %s284_s16 = sshll.u32 %s271_s22, 4  ;;  %s1721_s16 = int_to_ptr.vmem [resolvable:$true] %s284_s16 }
  0x51   : > { %s1451_s9 = scalar_lea.hbm %s1719_s19, %s1708_s23  ;;  %s1455_s20 = scalar_lea.hbm %s1992_s0, 2176 }
  0x52   : > { %p1452_p1 = scmp.ne.s32.totalorder %s1719_s19, %s1451_s9  ;;  %p1456_p11 = scmp.lt.s32.totalorder %s1719_s19, %s1992_s0 }
  0x53   : > { %p1457_p4 = scmp.lt.s32.totalorder %s1455_s20, %s1451_s9 }
  0x54   : > { %p1453_p3 = pnand %p1452_p1, %p1111_p0 }
  0x55   : > { %p1458_p6 = por %p1457_p4, %p1456_p11 }
  0x56   : > { %p1454_p7 = pneg %p1453_p3 }
  0x58   : > { %p1459_p12 = pnand %p1458_p6, %p1454_p7 }
  0x5a   : > { %1462 = shalt.err (!%p1459_p12)
}
  0x5b   : > { %s1463_s22 = scalar_lea.vmem %s1721_s16, %s1708_s23  ;;  %s1558_s11 = smov [#allocation2]  }
  0x5c   : > { %p1464_p5 = scmp.ne.s32.totalorder %s1721_s16, %s1463_s22  ;;  %s1467_s29 = sshll.u32 %s1558_s11, 4  ;;  %s1468_s29 = int_to_ptr.vmem [resolvable:$false] %s1467_s29 }
  0x5d   : > { %s1469_s8 = scalar_lea.vmem %s1468_s29, 2048  ;;  %p1470_p9 = scmp.lt.s32.totalorder %s1721_s16, %s1468_s29 }
  0x5e   : > { %p1465_p13 = pnand %p1464_p5, %p1111_p0  ;;  %p1471_p10 = scmp.lt.s32.totalorder %s1469_s8, %s1463_s22 }
  0x60   : > { %p1466_p8 = pneg %p1465_p13  ;;  %p1472_p2 = por %p1471_p10, %p1470_p9 }
  0x62   : > { %p1473_p1 = pnand %p1472_p2, %p1466_p8 }
  0x64   : > { %1476 = shalt.err (!%p1473_p1)
}
  0x65   : > { %s1559_s2 = smov 128   ;;  %s1560_s3 = smov 8  }
  0x66   : > { %290 = dma.hbm_to_vmem [thread:$0]  (%p1111_p0), %s1719_s19, %s1708_s23, %s1721_s16, %s1711_s18, %s1559_s2, %s1559_s2, %s1560_s3  }
  0x67 PF: > { %p2014_p3 = scmp.ne.s32.totalorder %s2009_s15, 0 }
  0x68   : > { %s1750_s9 = sand.u32 (!%p2014_p3), 1, %s1541_s25   ;;  %p2015_p7 = scmp.ne.s32.totalorder (!%p2014_p3), %s2006_s12, 0 }
  0x69   : > { %296 = sbr.rel (%p2014_p3) target bundleno = 912 (0x390), region = 48  ;;  %s1116_s21 = sshll.u32 (!%p2014_p3), %s1750_s9, 6 }
  0x6a   : > { %s299_s17 = scalar_lea.sflag (!%p2014_p3), [#allocation3], %s1750_s9  ;;  %s302_s20 = scalar_lea.vmem (!%p2014_p3), [#allocation2], %s1116_s21 }
  0x6e   : > { %1520 = dma.done.wait (%p2015_p7), %s299_s17, 1024  }
  0x6f   : > { %1522 = vsyncadd (%p2015_p7), %s299_s17, 4294966272  ;;  %p2016_p0 = scmp.eq.s32.totalorder %s1626_s28, 0 }
  0x71   : > { %1524 = dma.done.wait (%p2016_p0), [#allocation6], 2064   ;;  %p2017_p11 = pmov %p2016_p0 }
  0x72   : > { %p2018_p4 = pmov %p2016_p0 }
  0x73   : > { %1526 = vsyncadd (%p2017_p11), [#allocation6], 4294965232 }
  0x74   : > { %1528 = dma.done.wait (%p2018_p4), [#allocation9], 2048   ;;  %p2019_p6 = pmov %p2016_p0 }
  0x75   : > { %v1768_v0 = vld [vmem:[%s302_s20] sm:$0xff]  ;;  %v1770_v1 = vld [vmem:[%s302_s20 + $0x10] sm:$0xff]  ;;  %v1774_v2 = vld [vmem:[%s302_s20 + $0x8] sm:$0xff]  ;;  %v1561_v55 = vmov 0   ;;  %s1914_s22 = scalar_lea.vmem [#allocation10], %s1116_s21  ;;  %s981_s11 = scalar_lea.sflag [#allocation4], %s1750_s9 }
  0x76   : > { %1530 = vsyncadd (%p2019_p6), [#allocation9], 4294965248  ;;  %364 = vadd.xlane.f32.xlu0 %v1768_v0  ;;  %368 = vadd.xlane.f32.xlu1 %v1770_v1  ;;  %v1776_v3 = vld [vmem:[%s302_s20 + $0x18] sm:$0xff]  ;;  %v1778_v4 = vld [vmem:[%s302_s20 + $0x20] sm:$0xff]  ;;  %p2020_p12 = scmp.ne.s32.totalorder %s2007_s13, 0 }
  0x77   : > { %v1780_v5 = vld [vmem:[%s302_s20 + $0x28] sm:$0xff]  ;;  %v1784_v6 = vld [vmem:[%s302_s20 + $0x30] sm:$0xff]  ;;  %v1786_v7 = vld [vmem:[%s302_s20 + $0x38] sm:$0xff]  ;;  %636 = vmatprep.mubr.bf16.mxu0 %v1561_v55  ;;  %s1156_s29 = sshll.u32 (%p2020_p12), %s1626_s28, 3 }
  0x78   : > { %v1285_v8 = vld [vmem:[#allocation7 + $0x74] ss:$8 sps:$4 sm:$0xff]   ;;  %v1287_v9 = vld [vmem:[#allocation7 + $0x70] ss:$8 sps:$4 sm:$0xff]   ;;  %v1288_v41 = vld [vmem:[#allocation7 + $0x64] ss:$8 sps:$4 sm:$0xff]  }
  0x79   : > { %604 = vmatprep.subr.bf16.mxu0 %v1285_v8  ;;  %v1290_v42 = vld [vmem:[#allocation7 + $0x60] ss:$8 sps:$4 sm:$0xff]   ;;  %v1291_v44 = vld [vmem:[#allocation7 + $0x54] ss:$8 sps:$4 sm:$0xff]   ;;  %v1293_v45 = vld [vmem:[#allocation7 + $0x50] ss:$8 sps:$4 sm:$0xff]  }
  0x7a   : > { %366 = vadd.xlane.f32.xlu0 %v1774_v2  ;;  %370 = vadd.xlane.f32.xlu1 %v1776_v3  ;;  %v1294_v46 = vld [vmem:[#allocation7 + $0x44] ss:$8 sps:$4 sm:$0xff]   ;;  %v1296_v47 = vld [vmem:[#allocation7 + $0x40] ss:$8 sps:$4 sm:$0xff]   ;;  %v1297_v48 = vld [vmem:[#allocation7 + $0x34] ss:$8 sps:$4 sm:$0xff]  }
  0x7b   : > { %605 = vmatpush1.bf16.msra.mxu0 %v1287_v9  ;;  %v1299_v49 = vld [vmem:[#allocation7 + $0x30] ss:$8 sps:$4 sm:$0xff]   ;;  %v1300_v50 = vld [vmem:[#allocation7 + $0x24] ss:$8 sps:$4 sm:$0xff]   ;;  %v1302_v51 = vld [vmem:[#allocation7 + $0x20] ss:$8 sps:$4 sm:$0xff]  }
  0x7c   : > { %606 = vmatprep.subr.bf16.mxu0 %v1288_v41  ;;  %v1303_v52 = vld [vmem:[#allocation7 + $0x14] ss:$8 sps:$4 sm:$0xff]   ;;  %v1305_v53 = vld [vmem:[#allocation7 + $0x10] ss:$8 sps:$4 sm:$0xff]   ;;  %v1306_v54 = vld [vmem:[#allocation7 + $0x4] ss:$8 sps:$4 sm:$0xff]  }
  0x7d   : > { %v1308_v56 = vld [vmem:[#allocation7] ss:$8 sps:$4 sm:$0xff]   ;;  %s989_s8 = ssub.s32 (%p2020_p12), 17, %s1156_s29 }
  0x7e   : > { %372 = vadd.xlane.f32.xlu0 %v1778_v4  ;;  %374 = vadd.xlane.f32.xlu1 %v1780_v5  ;;  %p990_p5 = scmp.lt.s32.totalorder (%p2020_p12), %s989_s8, 8 }
  0x7f   : > { %607 = vmatpush1.bf16.msra.mxu0 %v1290_v42 }
  0x80   : > { %608 = vmatprep.subr.bf16.mxu0 %v1291_v44 }
  0x82   : > { %376 = vadd.xlane.f32.xlu0 %v1784_v6  ;;  %378 = vadd.xlane.f32.xlu1 %v1786_v7 }
  0x83   : > { %609 = vmatpush1.bf16.msra.mxu0 %v1293_v45 }
  0x84   : > { %610 = vmatprep.subr.bf16.mxu0 %v1294_v46 }
  0x87   : > { %611 = vmatpush1.bf16.msra.mxu0 %v1296_v47 }
  0x88   : > { %612 = vmatprep.subr.bf16.mxu0 %v1297_v48 }
  0x8b   : > { %613 = vmatpush1.bf16.msra.mxu0 %v1299_v49 }
  0x8c   : > { %614 = vmatprep.subr.bf16.mxu0 %v1300_v50 }
  0x8f   : > { %615 = vmatpush1.bf16.msra.mxu0 %v1302_v51 }
  0x90   : > { %616 = vmatprep.subr.bf16.mxu0 %v1303_v52 }
  0x93   : > { %617 = vmatpush1.bf16.msra.mxu0 %v1305_v53 }
  0x94   : > { %618 = vmatprep.subr.bf16.mxu0 %v1306_v54 }
  0x97   : > { %619 = vmatpush1.bf16.msra.mxu0 %v1308_v56 }
  0xff   : > { %v365_v10 = vpop.xlane.xlu0 %364  ;;  %v369_v11 = vpop.xlane.xlu1 %368 }
 0x100   : > { %v381_v12 = vmul.f32 0.0078125, %v365_v10  ;;  %v383_v13 = vmul.f32 0.0078125, %v369_v11 }
 0x102   : > { %v1793_v14 = vsub.f32 %v1768_v0, %v381_v12  ;;  %v1796_v15 = vsub.f32 %v1770_v1, %v383_v13 }
 0x103   : > { %v367_v16 = vpop.xlane.xlu0 %366  ;;  %v371_v17 = vpop.xlane.xlu1 %370 }
 0x104   : > { %v382_v18 = vmul.f32 0.0078125, %v367_v16  ;;  %v397_v19 = vmul.f32 %v1793_v14, %v1793_v14  ;;  %v384_v20 = vmul.f32 0.0078125, %v371_v17  ;;  %v399_v23 = vmul.f32 %v1796_v15, %v1796_v15 }
 0x106   : > { %v1801_v21 = vsub.f32 %v1774_v2, %v382_v18  ;;  %405 = vadd.xlane.f32.xlu0 %v397_v19  ;;  %v1804_v22 = vsub.f32 %v1776_v3, %v384_v20 }
 0x107   : > { %v373_v24 = vpop.xlane.xlu0 %372  ;;  %v375_v25 = vpop.xlane.xlu1 %374 }
 0x108   : > { %v385_v26 = vmul.f32 0.0078125, %v373_v24  ;;  %v398_v27 = vmul.f32 %v1801_v21, %v1801_v21  ;;  %v386_v28 = vmul.f32 0.0078125, %v375_v25  ;;  %v400_v31 = vmul.f32 %v1804_v22, %v1804_v22 }
 0x10a   : > { %v1811_v29 = vsub.f32 %v1778_v4, %v385_v26  ;;  %409 = vadd.xlane.f32.xlu0 %v399_v23  ;;  %407 = vadd.xlane.f32.xlu1 %v398_v27  ;;  %v1814_v30 = vsub.f32 %v1780_v5, %v386_v28 }
 0x10b   : > { %v377_v32 = vpop.xlane.xlu0 %376  ;;  %v379_v33 = vpop.xlane.xlu1 %378 }
 0x10c   : > { %v387_v34 = vmul.f32 0.0078125, %v377_v32  ;;  %v401_v35 = vmul.f32 %v1811_v29, %v1811_v29  ;;  %v388_v36 = vmul.f32 0.0078125, %v379_v33  ;;  %v402_v39 = vmul.f32 %v1814_v30, %v1814_v30 }
 0x10e   : > { %v1821_v37 = vsub.f32 %v1784_v6, %v387_v34  ;;  %411 = vadd.xlane.f32.xlu1 %v400_v31  ;;  %413 = vadd.xlane.f32.xlu0 %v401_v35  ;;  %v1824_v38 = vsub.f32 %v1786_v7, %v388_v36  ;;  %v1121_v31 = vld [vmem:[%s1993_s1] ss:$0 sm:$0xff] }
 0x110   : > { %v403_v40 = vmul.f32 %v1821_v37, %v1821_v37  ;;  %v404_v43 = vmul.f32 %v1824_v38, %v1824_v38 }
 0x112   : > { %415 = vadd.xlane.f32.xlu1 %v402_v39  ;;  %417 = vadd.xlane.f32.xlu0 %v403_v40  ;;  %v1122_v40 = vld [vmem:[#allocation5] ss:$0 sm:$0xff] }
 0x116   : > { %419 = vadd.xlane.f32.xlu1 %v404_v43 }
 0x18f   : > { %v406_v57 = vpop.xlane.xlu0 %405 }
 0x190   : > { %v421_v58 = vmul.f32 0.0078125, %v406_v57 }
 0x192   : > { %v429_v59 = vadd.f32 1e-05, %v421_v58 }
 0x193   : > { %v408_v60 = vpop.xlane.xlu1 %407  ;;  %v410_v61 = vpop.xlane.xlu0 %409 }
 0x194   : > { %1325 = vrsqrt.f32 %v429_v59  ;;  %v422_v62 = vmul.f32 0.0078125, %v408_v60  ;;  %v423_v63 = vmul.f32 0.0078125, %v410_v61 }
 0x196   : > { %v430_v8 = vadd.f32 1e-05, %v422_v62  ;;  %v431_v9 = vadd.f32 1e-05, %v423_v63 }
 0x197   : > { %v412_v10 = vpop.xlane.xlu1 %411  ;;  %v414_v11 = vpop.xlane.xlu0 %413 }
 0x198   : > { %1327 = vrsqrt.f32 %v430_v8  ;;  %v424_v12 = vmul.f32 0.0078125, %v412_v10  ;;  %v425_v16 = vmul.f32 0.0078125, %v414_v11  ;;  %v1309_v10 = vld [vmem:[#allocation8 + $0x78] sm:$0xff]  }
 0x199   : > { %1329 = vrsqrt.f32 %v431_v9  ;;  %v1310_v11 = vld [vmem:[#allocation8 + $0x38] sm:$0xff]   ;;  %1166 = vmatprep.subr.bf16.mxu1 %v1309_v10 }
 0x19a   : > { %v432_v13 = vadd.f32 1e-05, %v424_v12  ;;  %v433_v19 = vadd.f32 1e-05, %v425_v16  ;;  %1167 = vmatpush3.bf16.msra.mxu1 %v1310_v11  ;;  %v1311_v12 = vld [vmem:[#allocation8 + $0x70] sm:$0xff]   ;;  %v1315_v16 = vld [vmem:[#allocation8 + $0x60] sm:$0xff]  }
 0x19b   : > { %v416_v17 = vpop.xlane.xlu1 %415  ;;  %v418_v23 = vpop.xlane.xlu0 %417  ;;  %1168 = vmatprep.subr.bf16.mxu1 %v1311_v12 }
 0x19c   : > { %1331 = vrsqrt.f32 %v432_v13  ;;  %v426_v18 = vmul.f32 0.0078125, %v416_v17  ;;  %v427_v27 = vmul.f32 0.0078125, %v418_v23  ;;  %v1312_v13 = vld [vmem:[#allocation8 + $0x30] sm:$0xff]   ;;  %v1316_v17 = vld [vmem:[#allocation8 + $0x20] sm:$0xff]   ;;  %v1321_v23 = vld [vmem:[#allocation8 + $0x48] sm:$0xff]  }
 0x19e   : > { %v434_v20 = vadd.f32 1e-05, %v426_v18  ;;  %v435_v34 = vadd.f32 1e-05, %v427_v27  ;;  %1169 = vmatpush3.bf16.msra.mxu1 %v1312_v13  ;;  %v1318_v18 = vld [vmem:[#allocation8 + $0x18] sm:$0xff]   ;;  %v506_v27 = vlaneseq }
 0x19f   : > { %v420_v24 = vpop.xlane.xlu1 %419 }
 0x1a0   : > { %1333 = vrsqrt.f32 %v434_v20  ;;  %v428_v25 = vmul.f32 0.0078125, %v420_v24  ;;  %v1320_v20 = vld [vmem:[#allocation8 + $0x10] sm:$0xff]   ;;  %v1322_v24 = vld [vmem:[#allocation8 + $0x8] sm:$0xff]  }
 0x1a1   : > { %v1326_v26 = vpop.eup %1325  ;;  %1335 = vrsqrt.f32 %v433_v19  ;;  %v1319_v19 = vld [vmem:[#allocation8 + $0x50] sm:$0xff]  }
 0x1a2   : > { %v445_v28 = vmul.f32 %v1326_v26, %v1793_v14  ;;  %v436_v32 = vadd.f32 1e-05, %v428_v25  ;;  %v1323_v25 = vld [vmem:[#allocation8 + $0x40] sm:$0xff]  }
 0x1a3   : > { %v1324_v26 = vld [vmem:[#allocation8] sm:$0xff]  }
 0x1a4   : > { %v460_v36 = vmul.f32 %v1121_v31, %v445_v28  ;;  %1337 = vrsqrt.f32 %v436_v32  ;;  %v507_v28 = vshrl.u32 %v506_v27, 7 }
 0x1a5   : > { %v1328_v33 = vpop.eup %1327  ;;  %1339 = vrsqrt.f32 %v435_v34 }
 0x1a6   : > { %v446_v35 = vmul.f32 %v1328_v33, %v1801_v21  ;;  %v1330_v39 = vpop.eup %1329  ;;  %v475_v43 = vadd.f32 %v1122_v40, %v460_v36  ;;  %v1850_v33 = vsub.s32 0, %v507_v28  ;;  %v512_v34 = vsub.s32 2, %v507_v28 }
 0x1a7   : > { %v447_v14 = vmul.f32 %v1330_v39, %v1796_v15 }
 0x1a8   : > { %v461_v41 = vmul.f32 %v1121_v31, %v446_v35 }
 0x1a9   : > { %v1332_v42 = vpop.eup %1331  ;;  %v462_v49 = vmul.f32 %v1121_v31, %v447_v14 }
 0x1aa   : > { %v476_v44 = vadd.f32 %v1122_v40, %v461_v41  ;;  %v448_v45 = vmul.f32 %v1332_v42, %v1804_v22 }
 0x1ab   : > { %v477_v52 = vadd.f32 %v1122_v40, %v462_v49 }
 0x1ac   : > { %v483_v46 = vpack.c.bf16 %v476_v44, %v475_v43  ;;  %v463_v47 = vmul.f32 %v1121_v31, %v448_v45 }
 0x1ad   : > { %v1334_v48 = vpop.eup %1333 }
 0x1ae   : > { %637 = vmatmul.mubr.bf16.vlgmr.msra.gmra.mxu0 %v483_v46  ;;  %v1336_v50 = vpop.eup %1335  ;;  %v478_v21 = vadd.f32 %v1122_v40, %v463_v47  ;;  %v450_v51 = vmul.f32 %v1334_v48, %v1814_v30 }
 0x1af   : > { %646 = vmatprep.mubr.bf16.mxu0 %v1561_v55  ;;  %v449_v53 = vmul.f32 %v1336_v50, %v1811_v29 }
 0x1b0   : > { %v484_v54 = vpack.c.bf16 %v478_v21, %v477_v52  ;;  %v465_v56 = vmul.f32 %v1121_v31, %v450_v51 }
 0x1b1   : > { %v1338_v57 = vpop.eup %1337  ;;  %v464_v22 = vmul.f32 %v1121_v31, %v449_v53 }
 0x1b2   : > { %v1340_v15 = vpop.eup %1339  ;;  %v480_v58 = vadd.f32 %v1122_v40, %v465_v56  ;;  %v452_v59 = vmul.f32 %v1338_v57, %v1824_v38  ;;  %v1313_v38 = vld [vmem:[#allocation8 + $0x68] sm:$0xff]  }
 0x1b3   : > { %v479_v60 = vadd.f32 %v1122_v40, %v464_v22  ;;  %v451_v61 = vmul.f32 %v1340_v15, %v1821_v37  ;;  %v1314_v37 = vld [vmem:[#allocation8 + $0x28] sm:$0xff]   ;;  %1170 = vmatprep.subr.bf16.mxu1 %v1313_v38 }
 0x1b4   : > { %v467_v63 = vmul.f32 %v1121_v31, %v452_v59  ;;  %1171 = vmatpush3.bf16.msra.mxu1 %v1314_v37 }
 0x1b5   : > { %v485_v62 = vpack.c.bf16 %v480_v58, %v479_v60  ;;  %v466_v30 = vmul.f32 %v1121_v31, %v451_v61  ;;  %1172 = vmatprep.subr.bf16.mxu1 %v1315_v16  ;;  %v503_v31 = vld [vmem:[%s1996_s4] sm:$0x3] }
 0x1b6   : > { %647 = vmatmul.mubr.bf16.gmra.mxu0 %v484_v54  ;;  %v482_v29 = vadd.f32 %v1122_v40, %v467_v63  ;;  %v504_v32 = vunpack.c.l.bf16 %v503_v31 }
 0x1b7   : > { %656 = vmatprep.mubr.bf16.mxu0 %v1561_v55  ;;  %v481_v8 = vadd.f32 %v1122_v40, %v466_v30 }
 0x1b8   : > { %1173 = vmatpush3.bf16.msra.mxu1 %v1316_v17  ;;  %v509_v35 = vrot.slane %v504_v32, %v1850_v33  ;;  %v513_v36 = vrot.slane %v504_v32, %v512_v34 }
 0x1b9   : > { %v486_v9 = vpack.c.bf16 %v482_v29, %v481_v8 }
 0x1ba   : > { %v1854_v39 = vrot.slane %v509_v35, %v1850_v33  ;;  %v1857_v40 = vrot.slane %v513_v36, %v1850_v33 }
 0x1be   : > { %657 = vmatmul.mubr.bf16.gmra.mxu0 %v485_v62 }
 0x1bf   : > { %666 = vmatprep.mubr.bf16.mxu0 %v1561_v55  ;;  %v1317_v55 = vld [vmem:[#allocation8 + $0x58] sm:$0xff]  }
 0x1c0   : > { %1174 = vmatprep.subr.bf16.mxu1 %v1317_v55 }
 0x1c1   : > { %1175 = vmatpush3.bf16.msra.mxu1 %v1318_v18 }
 0x1c2   : > { %1176 = vmatprep.subr.bf16.mxu1 %v1319_v19 }
 0x1c5   : > { %1177 = vmatpush3.bf16.msra.mxu1 %v1320_v20 }
 0x1c6   : > { %667 = vmatmul.mubr.bf16.gmra.mxu0 %v486_v9  ;;  %1178 = vmatprep.subr.bf16.mxu1 %v1321_v23 }
 0x1c9   : > { %1179 = vmatpush3.bf16.msra.mxu1 %v1322_v24 }
 0x1ca   : > { %1180 = vmatprep.subr.bf16.mxu1 %v1323_v25 }
 0x1cd   : > { %1181 = vmatpush3.bf16.msra.mxu1 %v1324_v26 }
 0x26e   : > { %v638_v41 = vpop.f32.mrf.mxu0 }
 0x26f   : > { %v639_v42 = vadd.f32 %v638_v41, %v1854_v39 }
 0x270   : > { %v640_v43 = vpop.f32.mrf.mxu0 }
 0x271   : > { %v693_v44 = vmul.f32 0.70710677, %v639_v42  ;;  %v641_v14 = vadd.f32 %v640_v43, %v1857_v40  ;;  %v677_v25 = vmul.f32 0.5, %v639_v42 }
 0x272   : > { %v642_v45 = vpop.f32.mrf.mxu0 }
 0x273   : > { %v694_v46 = vmul.f32 0.70710677, %v641_v14  ;;  %v643_v47 = vadd.f32 %v642_v45, %v1854_v39  ;;  %1341 = verf.f32 %v693_v44  ;;  %v678_v26 = vmul.f32 0.5, %v641_v14 }
 0x274   : > { %v644_v48 = vpop.f32.mrf.mxu0 }
 0x275   : > { %v695_v49 = vmul.f32 0.70710677, %v643_v47  ;;  %v645_v50 = vadd.f32 %v644_v48, %v1857_v40  ;;  %1343 = verf.f32 %v694_v46  ;;  %v679_v20 = vmul.f32 0.5, %v643_v47 }
 0x276   : > { %v648_v21 = vpop.f32.mrf.mxu0 }
 0x277   : > { %1345 = verf.f32 %v695_v49  ;;  %v696_v51 = vmul.f32 0.70710677, %v645_v50  ;;  %v1864_v52 = vadd.f32 %v648_v21, %v1854_v39  ;;  %v680_v31 = vmul.f32 0.5, %v645_v50 }
 0x278   : > { %v650_v53 = vpop.f32.mrf.mxu0 }
 0x279   : > { %1347 = verf.f32 %v696_v51  ;;  %v1867_v54 = vadd.f32 %v650_v53, %v1857_v40  ;;  %v697_v56 = vmul.f32 0.70710677, %v1864_v52 }
 0x27a   : > { %v652_v57 = vpop.f32.mrf.mxu0 }
 0x27b   : > { %v698_v15 = vmul.f32 0.70710677, %v1867_v54  ;;  %v653_v22 = vadd.f32 %v652_v57, %v1854_v39 }
 0x27c   : > { %v654_v58 = vpop.f32.mrf.mxu0 }
 0x27d   : > { %1349 = verf.f32 %v698_v15  ;;  %v699_v59 = vmul.f32 0.70710677, %v653_v22  ;;  %v655_v60 = vadd.f32 %v654_v58, %v1857_v40  ;;  %v682_v58 = vmul.f32 0.5, %v1867_v54 }
 0x27e   : > { %1351 = verf.f32 %v697_v56  ;;  %v658_v61 = vpop.f32.mrf.mxu0 }
 0x27f   : > { %1353 = verf.f32 %v699_v59  ;;  %v700_v62 = vmul.f32 0.70710677, %v655_v60  ;;  %v1874_v63 = vadd.f32 %v658_v61, %v1854_v39  ;;  %v683_v59 = vmul.f32 0.5, %v653_v22 }
 0x280   : > { %v660_v30 = vpop.f32.mrf.mxu0  ;;  %v1342_v8 = vpop.eup %1341  ;;  %v684_v61 = vmul.f32 0.5, %v655_v60 }
 0x281   : > { %1355 = verf.f32 %v700_v62  ;;  %v701_v29 = vmul.f32 0.70710677, %v1874_v63  ;;  %v1878_v9 = vadd.f32 %v660_v30, %v1857_v40  ;;  %v725_v19 = vadd.f32 1.0, %v1342_v8 }
 0x282   : > { %v662_v10 = vpop.f32.mrf.mxu0  ;;  %v1344_v11 = vpop.eup %1343 }
 0x283   : > { %v1881_v12 = vadd.f32 %v662_v10, %v1854_v39  ;;  %v702_v38 = vmul.f32 0.70710677, %v1878_v9  ;;  %1357 = verf.f32 %v701_v29  ;;  %v726_v24 = vadd.f32 1.0, %v1344_v11 }
 0x284   : > { %v1346_v13 = vpop.eup %1345  ;;  %v664_v37 = vpop.f32.mrf.mxu0  ;;  %v741_v43 = vmul.f32 %v725_v19, %v677_v25  ;;  %v686_v19 = vmul.f32 0.5, %v1878_v9  ;;  %v685_v25 = vmul.f32 0.5, %v1874_v63 }
 0x285   : > { %v727_v16 = vadd.f32 1.0, %v1346_v13  ;;  %v703_v17 = vmul.f32 0.70710677, %v1881_v12  ;;  %v1886_v55 = vadd.f32 %v664_v37, %v1857_v40  ;;  %1359 = verf.f32 %v702_v38 }
 0x286   : > { %v1348_v18 = vpop.eup %1347  ;;  %v668_v23 = vpop.f32.mrf.mxu0  ;;  %v742_v45 = vmul.f32 %v726_v24, %v678_v26 }
 0x287   : > { %1361 = verf.f32 %v703_v17  ;;  %v704_v27 = vmul.f32 0.70710677, %v1886_v55  ;;  %v743_v28 = vmul.f32 %v727_v16, %v679_v20  ;;  %v1890_v32 = vadd.f32 %v668_v23, %v1854_v39 }
 0x288   : > { %v670_v34 = vpop.f32.mrf.mxu0  ;;  %v728_v35 = vadd.f32 1.0, %v1348_v18  ;;  %v688_v23 = vmul.f32 0.5, %v1886_v55 }
 0x289   : > { %1363 = verf.f32 %v704_v27  ;;  %v1893_v36 = vadd.f32 %v670_v34, %v1857_v40  ;;  %v705_v46 = vmul.f32 0.70710677, %v1890_v32  ;;  %v757_v51 = vpack.c.bf16 %v743_v28, %v741_v43 }
 0x28a   : > { %v1350_v41 = vpop.eup %1349  ;;  %v672_v44 = vpop.f32.mrf.mxu0  ;;  %v744_v42 = vmul.f32 %v728_v35, %v680_v31  ;;  %v689_v63 = vmul.f32 0.5, %v1890_v32 }
 0x28b   : > { %v1352_v14 = vpop.eup %1351  ;;  %v706_v47 = vmul.f32 0.70710677, %v1893_v36  ;;  %v673_v49 = vadd.f32 %v672_v44, %v1854_v39  ;;  %v730_v53 = vadd.f32 1.0, %v1350_v41  ;;  %v681_v39 = vmul.f32 0.5, %v1864_v52 }
 0x28c   : > { %v1354_v48 = vpop.eup %1353  ;;  %v674_v50 = vpop.f32.mrf.mxu0  ;;  %v758_v21 = vpack.c.bf16 %v744_v42, %v742_v45  ;;  %v729_v30 = vadd.f32 1.0, %v1352_v14  ;;  %v687_v52 = vmul.f32 0.5, %v1881_v12  ;;  %v690_v12 = vmul.f32 0.5, %v1893_v36  ;;  %v797_v36 = vld [vmem:[%s1998_s6] sm:$0x1] }
 0x28d   : > { %v731_v56 = vadd.f32 1.0, %v1354_v48  ;;  %1365 = verf.f32 %v706_v47  ;;  %v675_v57 = vadd.f32 %v674_v50, %v1857_v40  ;;  %v707_v62 = vmul.f32 0.70710677, %v673_v49 }
 0x28e   : > { %v1356_v15 = vpop.eup %1355  ;;  %931 = vmatprep.mubr.bf16.mxu1 %v758_v21  ;;  %1367 = verf.f32 %v705_v46  ;;  %v746_v10 = vmul.f32 %v730_v53, %v682_v58  ;;  %v745_v37 = vmul.f32 %v729_v30, %v681_v39  ;;  %v691_v14 = vmul.f32 0.5, %v673_v49 }
 0x28f   : > { %v732_v29 = vadd.f32 1.0, %v1356_v15  ;;  %v708_v8 = vmul.f32 0.70710677, %v675_v57  ;;  %932 = vmatmul.mubr.bf16.vlgmr.msra.gmra.mxu1 %v757_v51  ;;  %1369 = verf.f32 %v707_v62  ;;  %v747_v11 = vmul.f32 %v731_v56, %v683_v59 }
 0x290   : > { %v1358_v40 = vpop.eup %1357  ;;  %v692_v46 = vmul.f32 0.5, %v675_v57  ;;  %v798_v15 = vunpack.c.l.bf16 %v797_v36 }
 0x291   : > { %v748_v13 = vmul.f32 %v732_v29, %v684_v61  ;;  %1371 = verf.f32 %v708_v8  ;;  %v759_v17 = vpack.c.bf16 %v747_v11, %v745_v37  ;;  %v733_v20 = vadd.f32 1.0, %v1358_v40 }
 0x292   : > { %v1360_v38 = vpop.eup %1359  ;;  %v802_v57 = vrot.slane %v798_v15, %v1850_v33 }
 0x293   : > { %v760_v54 = vpack.c.bf16 %v748_v13, %v746_v10  ;;  %v734_v60 = vadd.f32 1.0, %v1360_v38  ;;  %v749_v34 = vmul.f32 %v733_v20, %v685_v25 }
 0x294   : > { %v1362_v22 = vpop.eup %1361 }
 0x295   : > { %v735_v16 = vadd.f32 1.0, %v1362_v22  ;;  %939 = vmatprep.mubr.bf16.mxu1 %v760_v54  ;;  %v750_v26 = vmul.f32 %v734_v60, %v686_v19 }
 0x296   : > { %v1364_v18 = vpop.eup %1363 }
 0x297   : > { %v736_v24 = vadd.f32 1.0, %v1364_v18  ;;  %940 = vmatmul.mubr.bf16.gmra.mxu1 %v759_v17  ;;  %v751_v27 = vmul.f32 %v735_v16, %v687_v52 }
 0x299   : > { %v752_v28 = vmul.f32 %v736_v24, %v688_v23  ;;  %v761_v9 = vpack.c.bf16 %v751_v27, %v749_v34 }
 0x29a   : > { %v1366_v31 = vpop.eup %1365 }
 0x29b   : > { %v762_v35 = vpack.c.bf16 %v752_v28, %v750_v26  ;;  %v1368_v41 = vpop.eup %1367  ;;  %v738_v44 = vadd.f32 1.0, %v1366_v31 }
 0x29c   : > { %v1370_v43 = vpop.eup %1369  ;;  %v737_v55 = vadd.f32 1.0, %v1368_v41 }
 0x29d   : > { %947 = vmatprep.mubr.bf16.mxu1 %v762_v35  ;;  %v739_v42 = vadd.f32 1.0, %v1370_v43  ;;  %v754_v48 = vmul.f32 %v738_v44, %v690_v12 }
 0x29e   : > { %v1372_v45 = vpop.eup %1371  ;;  %v753_v51 = vmul.f32 %v737_v55, %v689_v63 }
 0x29f   : > { %v740_v47 = vadd.f32 1.0, %v1372_v45  ;;  %948 = vmatmul.mubr.bf16.gmra.mxu1 %v761_v9  ;;  %v755_v50 = vmul.f32 %v739_v42, %v691_v14 }
 0x2a1   : > { %v756_v21 = vmul.f32 %v740_v47, %v692_v46  ;;  %v763_v56 = vpack.c.bf16 %v755_v50, %v753_v51 }
 0x2a3   : > { %v764_v53 = vpack.c.bf16 %v756_v21, %v754_v48 }
 0x2a5   : > { %955 = vmatprep.mubr.bf16.mxu1 %v764_v53 }
 0x2a7   : > { %956 = vmatmul.mubr.bf16.gmra.mxu1 %v763_v56 }
 0x34f   : > { %v1182_v49 = vpop.f32.mrf.mxu1 }
 0x351   : > { %v1183_v58 = vpop.f32.mrf.mxu1 }
 0x352   : > { %v1184_v59 = vadd.f32 %v1183_v58, %v1182_v49 }
 0x353   : > { %v1185_v32 = vpop.f32.mrf.mxu1 }
 0x354   : > { %v934_v61 = vadd.f32 %v1184_v59, %v802_v57 }
 0x355   : > { %v1186_v62 = vpop.f32.mrf.mxu1 }
 0x356   : > { %v964_v30 = vadd.f32 %v934_v61, %v1768_v0  ;;  %v1187_v29 = vadd.f32 %v1186_v62, %v1185_v32 }
 0x357   : > { %v1188_v8 = vpop.f32.mrf.mxu1 }
 0x358   : > { %972 = vst [vmem:[%s1914_s22] sm:$0xff] %v964_v30  ;;  %v937_v39 = vadd.f32 %v1187_v29, %v802_v57 }
 0x359   : > { %v1189_v10 = vpop.f32.mrf.mxu1 }
 0x35a   : > { %v965_v33 = vadd.f32 %v937_v39, %v1774_v2  ;;  %v1190_v11 = vadd.f32 %v1189_v10, %v1188_v8 }
 0x35b   : > { %v1191_v13 = vpop.f32.mrf.mxu1 }
 0x35c   : > { %973 = vst [vmem:[%s1914_s22 + $0x8] sm:$0xff] %v965_v33  ;;  %v942_v40 = vadd.f32 %v1190_v11, %v802_v57 }
 0x35d   : > { %v1192_v38 = vpop.f32.mrf.mxu1 }
 0x35e   : > { %v966_v0 = vadd.f32 %v942_v40, %v1770_v1  ;;  %v1193_v37 = vadd.f32 %v1192_v38, %v1191_v13 }
 0x35f   : > { %v1194_v54 = vpop.f32.mrf.mxu1 }
 0x360   : > { %974 = vst [vmem:[%s1914_s22 + $0x10] sm:$0xff] %v966_v0  ;;  %v945_v22 = vadd.f32 %v1193_v37, %v802_v57 }
 0x361   : > { %v1195_v60 = vpop.f32.mrf.mxu1 }
 0x362   : > { %v967_v16 = vadd.f32 %v945_v22, %v1776_v3  ;;  %v1196_v17 = vadd.f32 %v1195_v60, %v1194_v54 }
 0x363   : > { %v1197_v18 = vpop.f32.mrf.mxu1 }
 0x364   : > { %975 = vst [vmem:[%s1914_s22 + $0x18] sm:$0xff] %v967_v16  ;;  %v950_v2 = vadd.f32 %v1196_v17, %v802_v57 }
 0x365   : > { %v1198_v19 = vpop.f32.mrf.mxu1 }
 0x366   : > { %v968_v20 = vadd.f32 %v950_v2, %v1778_v4  ;;  %v1199_v52 = vadd.f32 %v1198_v19, %v1197_v18 }
 0x367   : > { %v1200_v23 = vpop.f32.mrf.mxu1 }
 0x368   : > { %976 = vst [vmem:[%s1914_s22 + $0x20] sm:$0xff] %v968_v20  ;;  %v953_v1 = vadd.f32 %v1199_v52, %v802_v57 }
 0x369   : > { %v1201_v24 = vpop.f32.mrf.mxu1 }
 0x36a   : > { %v969_v25 = vadd.f32 %v953_v1, %v1780_v5  ;;  %v1202_v26 = vadd.f32 %v1201_v24, %v1200_v23 }
 0x36b   : > { %v1203_v27 = vpop.f32.mrf.mxu1 }
 0x36c   : > { %977 = vst [vmem:[%s1914_s22 + $0x28] sm:$0xff] %v969_v25  ;;  %v958_v3 = vadd.f32 %v1202_v26, %v802_v57 }
 0x36d   : > { %v1204_v28 = vpop.f32.mrf.mxu1 }
 0x36e   : > { %v970_v31 = vadd.f32 %v958_v3, %v1784_v6  ;;  %v1205_v34 = vadd.f32 %v1204_v28, %v1203_v27 }
 0x370   : > { %978 = vst [vmem:[%s1914_s22 + $0x30] sm:$0xff] %v970_v31  ;;  %v961_v35 = vadd.f32 %v1205_v34, %v802_v57  ;;  %987 = sbr.rel (!%p2020_p12) target bundleno = 912 (0x390), region = 68 }
 0x372   : > { %v971_v4 = vadd.f32 %v961_v35, %v1786_v7 }
 0x374   : > { %979 = vst [vmem:[%s1914_s22 + $0x38] sm:$0xff] %v971_v4 }
 0x375   : > { %s2029_s8 = smov (!%p990_p5, %s989_s8), 8 }
 0x376   : > { %s1935_s2 = sshll.u32 %s2029_s8, 7 }
 0x377   : > { %s994_s3 = ssub.s32 1024, %s1935_s2 }
 0x378   : > { %995 = vsyncadd %s981_s11, %s994_s3  ;;  %p1158_p13 = scmp.ne.s32.totalorder %s1935_s2, 0  ;;  %s1165_s13 = sshll.u32 %s1626_s28, 10 }
 0x379   : > { %s1945_s20 = scalar_lea.hbm %s1999_s7, %s1165_s13  ;;  %s1000_s12 = sshll.u32 %s1914_s22, 4  ;;  %s1948_s12 = int_to_ptr.vmem [resolvable:$true] %s1000_s12 }
 0x37a   : > { %s1477_s15 = scalar_lea.vmem %s1948_s12, %s1935_s2  ;;  %s1562_s23 = smov [#allocation10]  }
 0x37b   : > { %p1478_p8 = scmp.ne.s32.totalorder %s1948_s12, %s1477_s15  ;;  %s1481_s18 = sshll.u32 %s1562_s23, 4  ;;  %s1482_s18 = int_to_ptr.vmem [resolvable:$false] %s1481_s18 }
 0x37c   : > { %s1483_s28 = scalar_lea.vmem %s1482_s18, 2048  ;;  %p1484_p2 = scmp.lt.s32.totalorder %s1948_s12, %s1482_s18 }
 0x37d   : > { %p1479_p9 = pnand %p1478_p8, %p1158_p13  ;;  %p1485_p1 = scmp.lt.s32.totalorder %s1483_s28, %s1477_s15 }
 0x37f   : > { %p1480_p10 = pneg %p1479_p9  ;;  %p1486_p3 = por %p1485_p1, %p1484_p2 }
 0x381   : > { %p1487_p7 = pnand %p1486_p3, %p1480_p10 }
 0x383   : > { %1490 = shalt.err (!%p1487_p7)
}
 0x384   : > { %s1491_s19 = scalar_lea.hbm %s1945_s20, %s1935_s2  ;;  %s1495_s29 = scalar_lea.hbm %s1999_s7, 2176 }
 0x385   : > { %p1492_p0 = scmp.ne.s32.totalorder %s1945_s20, %s1491_s19  ;;  %p1496_p6 = scmp.lt.s32.totalorder %s1945_s20, %s1999_s7 }
 0x386   : > { %p1497_p12 = scmp.lt.s32.totalorder %s1495_s29, %s1491_s19 }
 0x387   : > { %p1493_p11 = pnand %p1492_p0, %p1158_p13 }
 0x388   : > { %p1498_p5 = por %p1497_p12, %p1496_p6 }
 0x389   : > { %p1494_p4 = pneg %p1493_p11 }
 0x38b   : > { %p1499_p8 = pnand %p1498_p5, %p1494_p4 }
 0x38d   : > { %1502 = shalt.err (!%p1499_p8)
}
 0x38e   : > { %s1563_s13 = smov 128   ;;  %s1564_s21 = smov 8  }
 0x38f   : > { %1006 = dma.vmem_to_hbm [thread:$0]  (%p1158_p13), %s1948_s12, %s1935_s2, %s1945_s20, %s981_s11, %s1563_s13, %s1563_s13, %s1564_s21  }
 0x390 PF: > { %p1240_p9 = scmp.ge.s32.totalorder %s1549_s27, 2  ;;  %s1015_s17 = sand.u32 1, %s1537_s24  }
 0x391   : > { %p2021_p10 = scmp.ne.s32.totalorder %s2008_s14, 0  ;;  %s1016_s15 = scalar_lea.sflag [#allocation4], %s1015_s17 }
 0x393   : > { %p1231_p2 = pnand %p1240_p9, %p2021_p10 }
 0x395   : > { %p1232_p1 = pneg %p1231_p2 }
 0x397   : > { %1532 = dma.done.wait (%p1232_p1), %s1016_s15, 1024  }
 0x398   : > { %1534 = vsyncadd (%p1232_p1), %s1016_s15, 4294966272  ;;  %p22_p3 = scmp.ge.s32.totalorder %s1630_s30, 5   ;;  %s2022_s24 = smov %s1541_s25 }
 0x399   : > { %s2023_s25 = smov %s1545_s26  ;;  %s2024_s26 = smov %s1642_s10 }
 0x39a   : > { %s2025_s27 = smov %s1630_s30  ;;  %24 = sbr.rel (!%p22_p3) target bundleno = 10 (0xa), region = 105 }
 0x39f   :  { %1021 = vsyncpa [#allocation3], 1 }
 0x3a0   :  { %1023 = vsyncpa [#allocation3 + $0x1], 1 }
 0x3a1   :  { %1024 = vsyncpa [#allocation6], 1 }
 0x3a2   :  { %1025 = vsyncpa [#allocation9], 1 }
 0x3a3   :  { %1026 = vsyncpa [#allocation4], 1 }
 0x3a4   :  { %1028 = vsyncpa [#allocation4 + $0x1], 1 }

// kernel: tpu_custom_call.1
= control target key start
LH: loop header
LB: loop body
LE: loop exit
PB: predicated region body
PF: predicated region fallthrough
CT: control target
= control target key end

     0   :  { %s1992_s0 = inlined_call_operand.hbm [shape: f32[130,128], index: 0, kind: input, shape index: {}]   ;;  %s1993_s1 = inlined_call_operand.vmem [shape: f32[1,128], index: 1, kind: input, shape index: {}]   ;;  %s1994_s2 = inlined_call_operand.hbm [shape: f32[1,128], index: 2, kind: input, shape index: {}]   ;;  %s1995_s3 = inlined_call_operand.hbm [shape: bf16[128,256], index: 3, kind: input, shape index: {}]   ;;  %s1996_s4 = inlined_call_operand.vmem [shape: bf16[1,256], index: 4, kind: input, shape index: {}]   ;;  %s1997_s5 = inlined_call_operand.hbm [shape: bf16[256,128], index: 5, kind: input, shape index: {}]   ;;  %s1998_s6 = inlined_call_operand.vmem [shape: bf16[1,128], index: 6, kind: input, shape index: {}]   ;;  %s1999_s7 = inlined_call_operand.hbm [shape: f32[130,128], index: 7, kind: output, shape index: {}]  }
   0x1   :  { %2003 = sst [smem:[#allocation15_spill]] %s1994_s2 }
   0x2   :  { %2004 = sst [smem:[#allocation16_spill]] %s1995_s3 }
   0x3   :  { %12 = vsyncpa [#allocation3], 0 }
   0x4   :  { %14 = vsyncpa [#allocation3 + $0x1], 0 }
   0x5   :  { %15 = vsyncpa [#allocation6], 0 }
   0x6   :  { %16 = vsyncpa [#allocation9], 0 }
   0x7   :  { %17 = vsyncpa [#allocation4], 0 }
   0x8   :  { %19 = vsyncpa [#allocation4 + $0x1], 0  ;;  %s1605_s24 = smov 0   ;;  %s1607_s25 = smov 0  }
   0x9   :  { %s1609_s26 = smov 0   ;;  %s1611_s27 = smov 0  }
   0xa LB: > { %s1626_s28 = sadd.s32 4294967295, %s1549_s27   ;;  %s1102_s29 = sadd.s32 4294967294, %s1549_s27   ;;  %s1549_s27 = sphi %s1611_s27, %s2025_s27   ;;  %s1545_s26 = sphi %s1609_s26, %s2024_s26   ;;  %s1541_s25 = sphi %s1607_s25, %s2023_s25   ;;  %s1537_s24 = sphi %s1605_s24, %s2022_s24  }
   0xb   : > { %s1630_s30 = sadd.s32 1, %s1549_s27   ;;  %s32_s8 = sadd.s32 1, %s1545_s26 }
   0xc   : > { %s29_s9 = ssub.s32 %s1549_s27, %s1630_s30  ;;  %p39_p0 = scmp.ne.s32.totalorder %s1545_s26, %s1541_s25 }
   0xd   : > { %p30_p1 = scmp.eq.s32.totalorder %s29_s9, 0  ;;  %p40_p2 = scmp.eq.s32.totalorder %s1549_s27, 0 }
   0xe   : > { %p45_p3 = scmp.ne.s32.totalorder %s1541_s25, %s1537_s24  ;;  %p2000_p4 = scmp.eq.s32.totalorder %s1626_s28, 0 }
   0xf   : > { %s1642_s10 = scalar_select %p30_p1, %s1545_s26, %s32_s8  }
  0x10   : > { %p1644_p5 = por %p40_p2, %p39_p0  ;;  %p1650_p6 = por %p2000_p4, %p45_p3 }
  0x11   : > { %p195_p7 = scmp.eq.s32.totalorder %s1626_s28, 2  ;;  %p201_p8 = scmp.eq.s32.totalorder %s1102_s29, 2 }
  0x12   : > { %s2005_s11 = scalar_select %p1644_p5, 1, 0 }
  0x13   : > { %s2006_s12 = scalar_select %p1650_p6, 1, 0 }
  0x14   : > { %p1103_p9 = scmp.ge.s32.totalorder %s1549_s27, 1  ;;  %p208_p10 = scmp.lt.s32.totalorder %s1549_s27, 4 }
  0x15   : > { %p1657_p11 = por %p195_p7, %p39_p0  ;;  %p1661_p12 = por %p201_p8, %p45_p3 }
  0x16   : > { %p1665_p13 = pnand %p1103_p9, %p208_p10  ;;  %s1551_s16 = smov [#allocation5]  }
  0x17   : > { %s2007_s13 = scalar_select %p1657_p11, 1, 0 }
  0x18   : > { %s2008_s14 = scalar_select %p1661_p12, 1, 0 }
  0x19   : > { %s2009_s15 = scalar_select %p1665_p13, 1, 0 }
  0x1a   : > { %p1220_p1 = pneg %p1665_p13  ;;  %s224_s17 = sshll.u32 %s1551_s16, 4  ;;  %s225_s17 = int_to_ptr.vmem [resolvable:$true] %s224_s17 }
  0x1b   : > { %s1552_s18 = smov [#allocation7]   ;;  %s1384_s21 = scalar_lea.vmem %s225_s17, 16 }
  0x1c   : > { %s234_s19 = sshll.u32 %s1552_s18, 4  ;;  %p1673_p0 = pnand %p1220_p1, %p2000_p4  ;;  %s235_s19 = int_to_ptr.vmem [resolvable:$true] %s234_s19 }
  0x1d   : > { %p1385_p3 = scmp.ne.s32.totalorder %s225_s17, %s1384_s21  ;;  %s1391_s22 = scalar_lea.vmem %s225_s17, 32 }
  0x1e   : > { %p1375_p2 = pneg %p1673_p0  ;;  %p1392_p9 = scmp.lt.s32.totalorder %s225_s17, %s225_s17 }
  0x1f   : > { %p1393_p10 = scmp.lt.s32.totalorder %s1391_s22, %s1384_s21 }
  0x20   : > { %p1387_p7 = pnand %p1385_p3, %p1375_p2 }
  0x21   : > { %p1394_p12 = por %p1393_p10, %p1392_p9 }
  0x22   : > { %p1388_p8 = pneg %p1387_p7 }
  0x24   : > { %p1395_p11 = pnand %p1394_p12, %p1388_p8 }
  0x26   : > { %1398 = shalt.err (!%p1395_p11)
}
  0x27   : > { %s2011_s2 = sld [smem:[#allocation15_spill]]  ;;  %s1410_s8 = scalar_lea.vmem %s235_s19, 2048 }
  0x28   : > { %p1411_p1 = scmp.ne.s32.totalorder %s235_s19, %s1410_s8  ;;  %p1418_p7 = scmp.lt.s32.totalorder %s235_s19, %s235_s19 }
  0x29   : > { %p1419_p6 = scmp.lt.s32.totalorder %s1410_s8, %s1410_s8 }
  0x2a   : > { %p1413_p4 = pnand %p1411_p1, %p1375_p2 }
  0x2b   : > { %p1420_p13 = por %p1419_p6, %p1418_p7 }
  0x2c   : > { %p1414_p3 = pneg %p1413_p4 }
  0x2d   : > { %1223 = dma.hbm_to_vmem [thread:$0]  (!%p1673_p0), %s2011_s2, 16, %s225_s17, [#allocation6]  }
  0x2e   : > { %p1421_p5 = pnand %p1420_p13, %p1414_p3 }
  0x30   : > { %1424 = shalt.err (!%p1421_p5)
}
  0x31   : > { %s1553_s9 = smov 128   ;;  %s1554_s16 = smov 8  }
  0x32   : > { %s2012_s3 = sld [smem:[#allocation16_spill]]  ;;  %s1555_s17 = smov [#allocation8]  }
  0x33   : > { %s250_s22 = sshll.u32 %s1555_s17, 4  ;;  %s251_s22 = int_to_ptr.vmem [resolvable:$true] %s250_s22 }
  0x34   : > { %s1436_s23 = scalar_lea.vmem %s251_s22, 2048  ;;  %p1444_p12 = scmp.lt.s32.totalorder %s251_s22, %s251_s22 }
  0x35   : > { %p1437_p11 = scmp.ne.s32.totalorder %s251_s22, %s1436_s23  ;;  %p1445_p5 = scmp.lt.s32.totalorder %s1436_s23, %s1436_s23 }
  0x37   : > { %p1439_p4 = pnand %p1437_p11, %p1375_p2  ;;  %p1446_p13 = por %p1445_p5, %p1444_p12 }
  0x38   : > { %1226 = dma.hbm_to_vmem [thread:$0]  (!%p1673_p0), %s2012_s3, 2048, %s235_s19, [#allocation6], %s1553_s9, %s1553_s9, %s1554_s16  }
  0x39   : > { %p1440_p6 = pneg %p1439_p4 }
  0x3b   : > { %p1447_p8 = pnand %p1446_p13, %p1440_p6 }
  0x3d   : > { %1450 = shalt.err (!%p1447_p8)
}
  0x3e   : > { %s1556_s29 = smov 64   ;;  %s1557_s8 = smov 4  }
  0x3f   : > { %1229 = dma.hbm_to_vmem [thread:$0]  (!%p1673_p0), %s1997_s5, 2048, %s251_s22, [#allocation9], %s1556_s29, %s1556_s29, %s1557_s8  }
  0x40   : > { %p1107_p9 = scmp.ge.s32.totalorder %s1549_s27, 3 }
  0x41   : > { %p2013_p10 = scmp.ne.s32.totalorder (!%p1107_p9), %s2005_s11, 0 }
  0x42   : > { %263 = sbr.rel (%p1107_p9) target bundleno = 103 (0x67), region = 40 }
  0x47   : > { %266 = sbr.rel (!%p2013_p10) target bundleno = 103 (0x67), region = 44  ;;  %s267_s9 = sand.u32 (%p2013_p10), 1, %s1545_s26  }
  0x48   : > { %s1109_s16 = sshll.u32 (%p2013_p10), %s1549_s27, 3  ;;  %s1108_s21 = sshll.u32 (%p2013_p10), %s267_s9, 6 }
  0x49   : > { %s273_s17 = ssub.s32 (%p2013_p10), 17, %s1109_s16  ;;  %s1711_s18 = scalar_lea.sflag (%p2013_p10), [#allocation3], %s267_s9 }
  0x4a   : > { %p274_p2 = scmp.lt.s32.totalorder (%p2013_p10), %s273_s17, 8  ;;  %s271_s22 = scalar_lea.vmem (%p2013_p10), [#allocation2], %s1108_s21 }
  0x4c   : > { %s2027_s17 = smov (!%p274_p2, %s273_s17), 8 }
  0x4d   : > { %s1708_s23 = sshll.u32 %s2027_s17, 7 }
  0x4e   : > { %s278_s20 = ssub.s32 1024, %s1708_s23 }
  0x4f   : > { %279 = vsyncadd %s1711_s18, %s278_s20  ;;  %p1111_p0 = scmp.ne.s32.totalorder %s1708_s23, 0  ;;  %s1164_s11 = sshll.u32 %s1549_s27, 10 }
  0x50   : > { %s1719_s19 = scalar_lea.hbm %s1992_s0, %s1164_s11  ;;  %s284_s16 = sshll.u32 %s271_s22, 4  ;;  %s1721_s16 = int_to_ptr.vmem [resolvable:$true] %s284_s16 }
  0x51   : > { %s1451_s9 = scalar_lea.hbm %s1719_s19, %s1708_s23  ;;  %s1455_s20 = scalar_lea.hbm %s1992_s0, 2176 }
  0x52   : > { %p1452_p1 = scmp.ne.s32.totalorder %s1719_s19, %s1451_s9  ;;  %p1456_p11 = scmp.lt.s32.totalorder %s1719_s19, %s1992_s0 }
  0x53   : > { %p1457_p4 = scmp.lt.s32.totalorder %s1455_s20, %s1451_s9 }
  0x54   : > { %p1453_p3 = pnand %p1452_p1, %p1111_p0 }
  0x55   : > { %p1458_p6 = por %p1457_p4, %p1456_p11 }
  0x56   : > { %p1454_p7 = pneg %p1453_p3 }
  0x58   : > { %p1459_p12 = pnand %p1458_p6, %p1454_p7 }
  0x5a   : > { %1462 = shalt.err (!%p1459_p12)
}
  0x5b   : > { %s1463_s22 = scalar_lea.vmem %s1721_s16, %s1708_s23  ;;  %s1558_s11 = smov [#allocation2]  }
  0x5c   : > { %p1464_p5 = scmp.ne.s32.totalorder %s1721_s16, %s1463_s22  ;;  %s1467_s29 = sshll.u32 %s1558_s11, 4  ;;  %s1468_s29 = int_to_ptr.vmem [resolvable:$false] %s1467_s29 }
  0x5d   : > { %s1469_s8 = scalar_lea.vmem %s1468_s29, 2048  ;;  %p1470_p9 = scmp.lt.s32.totalorder %s1721_s16, %s1468_s29 }
  0x5e   : > { %p1465_p13 = pnand %p1464_p5, %p1111_p0  ;;  %p1471_p10 = scmp.lt.s32.totalorder %s1469_s8, %s1463_s22 }
  0x60   : > { %p1466_p8 = pneg %p1465_p13  ;;  %p1472_p2 = por %p1471_p10, %p1470_p9 }
  0x62   : > { %p1473_p1 = pnand %p1472_p2, %p1466_p8 }
  0x64   : > { %1476 = shalt.err (!%p1473_p1)
}
  0x65   : > { %s1559_s2 = smov 128   ;;  %s1560_s3 = smov 8  }
  0x66   : > { %290 = dma.hbm_to_vmem [thread:$0]  (%p1111_p0), %s1719_s19, %s1708_s23, %s1721_s16, %s1711_s18, %s1559_s2, %s1559_s2, %s1560_s3  }
  0x67 PF: > { %p2014_p3 = scmp.ne.s32.totalorder %s2009_s15, 0 }
  0x68   : > { %s1750_s9 = sand.u32 (!%p2014_p3), 1, %s1541_s25   ;;  %p2015_p7 = scmp.ne.s32.totalorder (!%p2014_p3), %s2006_s12, 0 }
  0x69   : > { %296 = sbr.rel (%p2014_p3) target bundleno = 912 (0x390), region = 48  ;;  %s1116_s21 = sshll.u32 (!%p2014_p3), %s1750_s9, 6 }
  0x6a   : > { %s299_s17 = scalar_lea.sflag (!%p2014_p3), [#allocation3], %s1750_s9  ;;  %s302_s20 = scalar_lea.vmem (!%p2014_p3), [#allocation2], %s1116_s21 }
  0x6e   : > { %1520 = dma.done.wait (%p2015_p7), %s299_s17, 1024  }
  0x6f   : > { %1522 = vsyncadd (%p2015_p7), %s299_s17, 4294966272  ;;  %p2016_p0 = scmp.eq.s32.totalorder %s1626_s28, 0 }
  0x71   : > { %1524 = dma.done.wait (%p2016_p0), [#allocation6], 2064   ;;  %p2017_p11 = pmov %p2016_p0 }
  0x72   : > { %p2018_p4 = pmov %p2016_p0 }
  0x73   : > { %1526 = vsyncadd (%p2017_p11), [#allocation6], 4294965232 }
  0x74   : > { %1528 = dma.done.wait (%p2018_p4), [#allocation9], 2048   ;;  %p2019_p6 = pmov %p2016_p0 }
  0x75   : > { %v1768_v0 = vld [vmem:[%s302_s20] sm:$0xff]  ;;  %v1770_v1 = vld [vmem:[%s302_s20 + $0x10] sm:$0xff]  ;;  %v1774_v2 = vld [vmem:[%s302_s20 + $0x8] sm:$0xff]  ;;  %v1561_v55 = vmov 0   ;;  %s1914_s22 = scalar_lea.vmem [#allocation10], %s1116_s21  ;;  %s981_s11 = scalar_lea.sflag [#allocation4], %s1750_s9 }
  0x76   : > { %1530 = vsyncadd (%p2019_p6), [#allocation9], 4294965248  ;;  %364 = vadd.xlane.f32.xlu0 %v1768_v0  ;;  %368 = vadd.xlane.f32.xlu1 %v1770_v1  ;;  %v1776_v3 = vld [vmem:[%s302_s20 + $0x18] sm:$0xff]  ;;  %v1778_v4 = vld [vmem:[%s302_s20 + $0x20] sm:$0xff]  ;;  %p2020_p12 = scmp.ne.s32.totalorder %s2007_s13, 0 }
  0x77   : > { %v1780_v5 = vld [vmem:[%s302_s20 + $0x28] sm:$0xff]  ;;  %v1784_v6 = vld [vmem:[%s302_s20 + $0x30] sm:$0xff]  ;;  %v1786_v7 = vld [vmem:[%s302_s20 + $0x38] sm:$0xff]  ;;  %636 = vmatprep.mubr.bf16.mxu0 %v1561_v55  ;;  %s1156_s29 = sshll.u32 (%p2020_p12), %s1626_s28, 3 }
  0x78   : > { %v1285_v8 = vld [vmem:[#allocation7 + $0x74] ss:$8 sps:$4 sm:$0xff]   ;;  %v1287_v9 = vld [vmem:[#allocation7 + $0x70] ss:$8 sps:$4 sm:$0xff]   ;;  %v1288_v41 = vld [vmem:[#allocation7 + $0x64] ss:$8 sps:$4 sm:$0xff]  }
  0x79   : > { %604 = vmatprep.subr.bf16.mxu0 %v1285_v8  ;;  %v1290_v42 = vld [vmem:[#allocation7 + $0x60] ss:$8 sps:$4 sm:$0xff]   ;;  %v1291_v44 = vld [vmem:[#allocation7 + $0x54] ss:$8 sps:$4 sm:$0xff]   ;;  %v1293_v45 = vld [vmem:[#allocation7 + $0x50] ss:$8 sps:$4 sm:$0xff]  }
  0x7a   : > { %366 = vadd.xlane.f32.xlu0 %v1774_v2  ;;  %370 = vadd.xlane.f32.xlu1 %v1776_v3  ;;  %v1294_v46 = vld [vmem:[#allocation7 + $0x44] ss:$8 sps:$4 sm:$0xff]   ;;  %v1296_v47 = vld [vmem:[#allocation7 + $0x40] ss:$8 sps:$4 sm:$0xff]   ;;  %v1297_v48 = vld [vmem:[#allocation7 + $0x34] ss:$8 sps:$4 sm:$0xff]  }
  0x7b   : > { %605 = vmatpush1.bf16.msra.mxu0 %v1287_v9  ;;  %v1299_v49 = vld [vmem:[#allocation7 + $0x30] ss:$8 sps:$4 sm:$0xff]   ;;  %v1300_v50 = vld [vmem:[#allocation7 + $0x24] ss:$8 sps:$4 sm:$0xff]   ;;  %v1302_v51 = vld [vmem:[#allocation7 + $0x20] ss:$8 sps:$4 sm:$0xff]  }
  0x7c   : > { %606 = vmatprep.subr.bf16.mxu0 %v1288_v41  ;;  %v1303_v52 = vld [vmem:[#allocation7 + $0x14] ss:$8 sps:$4 sm:$0xff]   ;;  %v1305_v53 = vld [vmem:[#allocation7 + $0x10] ss:$8 sps:$4 sm:$0xff]   ;;  %v1306_v54 = vld [vmem:[#allocation7 + $0x4] ss:$8 sps:$4 sm:$0xff]  }
  0x7d   : > { %v1308_v56 = vld [vmem:[#allocation7] ss:$8 sps:$4 sm:$0xff]   ;;  %s989_s8 = ssub.s32 (%p2020_p12), 17, %s1156_s29 }
  0x7e   : > { %372 = vadd.xlane.f32.xlu0 %v1778_v4  ;;  %374 = vadd.xlane.f32.xlu1 %v1780_v5  ;;  %p990_p5 = scmp.lt.s32.totalorder (%p2020_p12), %s989_s8, 8 }
  0x7f   : > { %607 = vmatpush1.bf16.msra.mxu0 %v1290_v42 }
  0x80   : > { %608 = vmatprep.subr.bf16.mxu0 %v1291_v44 }
  0x82   : > { %376 = vadd.xlane.f32.xlu0 %v1784_v6  ;;  %378 = vadd.xlane.f32.xlu1 %v1786_v7 }
  0x83   : > { %609 = vmatpush1.bf16.msra.mxu0 %v1293_v45 }
  0x84   : > { %610 = vmatprep.subr.bf16.mxu0 %v1294_v46 }
  0x87   : > { %611 = vmatpush1.bf16.msra.mxu0 %v1296_v47 }
  0x88   : > { %612 = vmatprep.subr.bf16.mxu0 %v1297_v48 }
  0x8b   : > { %613 = vmatpush1.bf16.msra.mxu0 %v1299_v49 }
  0x8c   : > { %614 = vmatprep.subr.bf16.mxu0 %v1300_v50 }
  0x8f   : > { %615 = vmatpush1.bf16.msra.mxu0 %v1302_v51 }
  0x90   : > { %616 = vmatprep.subr.bf16.mxu0 %v1303_v52 }
  0x93   : > { %617 = vmatpush1.bf16.msra.mxu0 %v1305_v53 }
  0x94   : > { %618 = vmatprep.subr.bf16.mxu0 %v1306_v54 }
  0x97   : > { %619 = vmatpush1.bf16.msra.mxu0 %v1308_v56 }
  0xff   : > { %v365_v10 = vpop.xlane.xlu0 %364  ;;  %v369_v11 = vpop.xlane.xlu1 %368 }
 0x100   : > { %v381_v12 = vmul.f32 0.0078125, %v365_v10  ;;  %v383_v13 = vmul.f32 0.0078125, %v369_v11 }
 0x102   : > { %v1793_v14 = vsub.f32 %v1768_v0, %v381_v12  ;;  %v1796_v15 = vsub.f32 %v1770_v1, %v383_v13 }
 0x103   : > { %v367_v16 = vpop.xlane.xlu0 %366  ;;  %v371_v17 = vpop.xlane.xlu1 %370 }
 0x104   : > { %v382_v18 = vmul.f32 0.0078125, %v367_v16  ;;  %v397_v19 = vmul.f32 %v1793_v14, %v1793_v14  ;;  %v384_v20 = vmul.f32 0.0078125, %v371_v17  ;;  %v399_v23 = vmul.f32 %v1796_v15, %v1796_v15 }
 0x106   : > { %v1801_v21 = vsub.f32 %v1774_v2, %v382_v18  ;;  %405 = vadd.xlane.f32.xlu0 %v397_v19  ;;  %v1804_v22 = vsub.f32 %v1776_v3, %v384_v20 }
 0x107   : > { %v373_v24 = vpop.xlane.xlu0 %372  ;;  %v375_v25 = vpop.xlane.xlu1 %374 }
 0x108   : > { %v385_v26 = vmul.f32 0.0078125, %v373_v24  ;;  %v398_v27 = vmul.f32 %v1801_v21, %v1801_v21  ;;  %v386_v28 = vmul.f32 0.0078125, %v375_v25  ;;  %v400_v31 = vmul.f32 %v1804_v22, %v1804_v22 }
 0x10a   : > { %v1811_v29 = vsub.f32 %v1778_v4, %v385_v26  ;;  %409 = vadd.xlane.f32.xlu0 %v399_v23  ;;  %407 = vadd.xlane.f32.xlu1 %v398_v27  ;;  %v1814_v30 = vsub.f32 %v1780_v5, %v386_v28 }
 0x10b   : > { %v377_v32 = vpop.xlane.xlu0 %376  ;;  %v379_v33 = vpop.xlane.xlu1 %378 }
 0x10c   : > { %v387_v34 = vmul.f32 0.0078125, %v377_v32  ;;  %v401_v35 = vmul.f32 %v1811_v29, %v1811_v29  ;;  %v388_v36 = vmul.f32 0.0078125, %v379_v33  ;;  %v402_v39 = vmul.f32 %v1814_v30, %v1814_v30 }
 0x10e   : > { %v1821_v37 = vsub.f32 %v1784_v6, %v387_v34  ;;  %411 = vadd.xlane.f32.xlu1 %v400_v31  ;;  %413 = vadd.xlane.f32.xlu0 %v401_v35  ;;  %v1824_v38 = vsub.f32 %v1786_v7, %v388_v36  ;;  %v1121_v31 = vld [vmem:[%s1993_s1] ss:$0 sm:$0xff] }
 0x110   : > { %v403_v40 = vmul.f32 %v1821_v37, %v1821_v37  ;;  %v404_v43 = vmul.f32 %v1824_v38, %v1824_v38 }
 0x112   : > { %415 = vadd.xlane.f32.xlu1 %v402_v39  ;;  %417 = vadd.xlane.f32.xlu0 %v403_v40  ;;  %v1122_v40 = vld [vmem:[#allocation5] ss:$0 sm:$0xff] }
 0x116   : > { %419 = vadd.xlane.f32.xlu1 %v404_v43 }
 0x18f   : > { %v406_v57 = vpop.xlane.xlu0 %405 }
 0x190   : > { %v421_v58 = vmul.f32 0.0078125, %v406_v57 }
 0x192   : > { %v429_v59 = vadd.f32 1e-05, %v421_v58 }
 0x193   : > { %v408_v60 = vpop.xlane.xlu1 %407  ;;  %v410_v61 = vpop.xlane.xlu0 %409 }
 0x194   : > { %1325 = vrsqrt.f32 %v429_v59  ;;  %v422_v62 = vmul.f32 0.0078125, %v408_v60  ;;  %v423_v63 = vmul.f32 0.0078125, %v410_v61 }
 0x196   : > { %v430_v8 = vadd.f32 1e-05, %v422_v62  ;;  %v431_v9 = vadd.f32 1e-05, %v423_v63 }
 0x197   : > { %v412_v10 = vpop.xlane.xlu1 %411  ;;  %v414_v11 = vpop.xlane.xlu0 %413 }
 0x198   : > { %1327 = vrsqrt.f32 %v430_v8  ;;  %v424_v12 = vmul.f32 0.0078125, %v412_v10  ;;  %v425_v16 = vmul.f32 0.0078125, %v414_v11  ;;  %v1309_v10 = vld [vmem:[#allocation8 + $0x78] sm:$0xff]  }
 0x199   : > { %1329 = vrsqrt.f32 %v431_v9  ;;  %v1310_v11 = vld [vmem:[#allocation8 + $0x38] sm:$0xff]   ;;  %1166 = vmatprep.subr.bf16.mxu1 %v1309_v10 }
 0x19a   : > { %v432_v13 = vadd.f32 1e-05, %v424_v12  ;;  %v433_v19 = vadd.f32 1e-05, %v425_v16  ;;  %1167 = vmatpush3.bf16.msra.mxu1 %v1310_v11  ;;  %v1311_v12 = vld [vmem:[#allocation8 + $0x70] sm:$0xff]   ;;  %v1315_v16 = vld [vmem:[#allocation8 + $0x60] sm:$0xff]  }
 0x19b   : > { %v416_v17 = vpop.xlane.xlu1 %415  ;;  %v418_v23 = vpop.xlane.xlu0 %417  ;;  %1168 = vmatprep.subr.bf16.mxu1 %v1311_v12 }
 0x19c   : > { %1331 = vrsqrt.f32 %v432_v13  ;;  %v426_v18 = vmul.f32 0.0078125, %v416_v17  ;;  %v427_v27 = vmul.f32 0.0078125, %v418_v23  ;;  %v1312_v13 = vld [vmem:[#allocation8 + $0x30] sm:$0xff]   ;;  %v1316_v17 = vld [vmem:[#allocation8 + $0x20] sm:$0xff]   ;;  %v1321_v23 = vld [vmem:[#allocation8 + $0x48] sm:$0xff]  }
 0x19e   : > { %v434_v20 = vadd.f32 1e-05, %v426_v18  ;;  %v435_v34 = vadd.f32 1e-05, %v427_v27  ;;  %1169 = vmatpush3.bf16.msra.mxu1 %v1312_v13  ;;  %v1318_v18 = vld [vmem:[#allocation8 + $0x18] sm:$0xff]   ;;  %v506_v27 = vlaneseq }
 0x19f   : > { %v420_v24 = vpop.xlane.xlu1 %419 }
 0x1a0   : > { %1333 = vrsqrt.f32 %v434_v20  ;;  %v428_v25 = vmul.f32 0.0078125, %v420_v24  ;;  %v1320_v20 = vld [vmem:[#allocation8 + $0x10] sm:$0xff]   ;;  %v1322_v24 = vld [vmem:[#allocation8 + $0x8] sm:$0xff]  }
 0x1a1   : > { %v1326_v26 = vpop.eup %1325  ;;  %1335 = vrsqrt.f32 %v433_v19  ;;  %v1319_v19 = vld [vmem:[#allocation8 + $0x50] sm:$0xff]  }
 0x1a2   : > { %v445_v28 = vmul.f32 %v1326_v26, %v1793_v14  ;;  %v436_v32 = vadd.f32 1e-05, %v428_v25  ;;  %v1323_v25 = vld [vmem:[#allocation8 + $0x40] sm:$0xff]  }
 0x1a3   : > { %v1324_v26 = vld [vmem:[#allocation8] sm:$0xff]  }
 0x1a4   : > { %v460_v36 = vmul.f32 %v1121_v31, %v445_v28  ;;  %1337 = vrsqrt.f32 %v436_v32  ;;  %v507_v28 = vshrl.u32 %v506_v27, 7 }
 0x1a5   : > { %v1328_v33 = vpop.eup %1327  ;;  %1339 = vrsqrt.f32 %v435_v34 }
 0x1a6   : > { %v446_v35 = vmul.f32 %v1328_v33, %v1801_v21  ;;  %v1330_v39 = vpop.eup %1329  ;;  %v475_v43 = vadd.f32 %v1122_v40, %v460_v36  ;;  %v1850_v33 = vsub.s32 0, %v507_v28  ;;  %v512_v34 = vsub.s32 2, %v507_v28 }
 0x1a7   : > { %v447_v14 = vmul.f32 %v1330_v39, %v1796_v15 }
 0x1a8   : > { %v461_v41 = vmul.f32 %v1121_v31, %v446_v35 }
 0x1a9   : > { %v1332_v42 = vpop.eup %1331  ;;  %v462_v49 = vmul.f32 %v1121_v31, %v447_v14 }
 0x1aa   : > { %v476_v44 = vadd.f32 %v1122_v40, %v461_v41  ;;  %v448_v45 = vmul.f32 %v1332_v42, %v1804_v22 }
 0x1ab   : > { %v477_v52 = vadd.f32 %v1122_v40, %v462_v49 }
 0x1ac   : > { %v483_v46 = vpack.c.bf16 %v476_v44, %v475_v43  ;;  %v463_v47 = vmul.f32 %v1121_v31, %v448_v45 }
 0x1ad   : > { %v1334_v48 = vpop.eup %1333 }
 0x1ae   : > { %637 = vmatmul.mubr.bf16.vlgmr.msra.gmra.mxu0 %v483_v46  ;;  %v1336_v50 = vpop.eup %1335  ;;  %v478_v21 = vadd.f32 %v1122_v40, %v463_v47  ;;  %v450_v51 = vmul.f32 %v1334_v48, %v1814_v30 }
 0x1af   : > { %646 = vmatprep.mubr.bf16.mxu0 %v1561_v55  ;;  %v449_v53 = vmul.f32 %v1336_v50, %v1811_v29 }
 0x1b0   : > { %v484_v54 = vpack.c.bf16 %v478_v21, %v477_v52  ;;  %v465_v56 = vmul.f32 %v1121_v31, %v450_v51 }
 0x1b1   : > { %v1338_v57 = vpop.eup %1337  ;;  %v464_v22 = vmul.f32 %v1121_v31, %v449_v53 }
 0x1b2   : > { %v1340_v15 = vpop.eup %1339  ;;  %v480_v58 = vadd.f32 %v1122_v40, %v465_v56  ;;  %v452_v59 = vmul.f32 %v1338_v57, %v1824_v38  ;;  %v1313_v38 = vld [vmem:[#allocation8 + $0x68] sm:$0xff]  }
 0x1b3   : > { %v479_v60 = vadd.f32 %v1122_v40, %v464_v22  ;;  %v451_v61 = vmul.f32 %v1340_v15, %v1821_v37  ;;  %v1314_v37 = vld [vmem:[#allocation8 + $0x28] sm:$0xff]   ;;  %1170 = vmatprep.subr.bf16.mxu1 %v1313_v38 }
 0x1b4   : > { %v467_v63 = vmul.f32 %v1121_v31, %v452_v59  ;;  %1171 = vmatpush3.bf16.msra.mxu1 %v1314_v37 }
 0x1b5   : > { %v485_v62 = vpack.c.bf16 %v480_v58, %v479_v60  ;;  %v466_v30 = vmul.f32 %v1121_v31, %v451_v61  ;;  %1172 = vmatprep.subr.bf16.mxu1 %v1315_v16  ;;  %v503_v31 = vld [vmem:[%s1996_s4] sm:$0x3] }
 0x1b6   : > { %647 = vmatmul.mubr.bf16.gmra.mxu0 %v484_v54  ;;  %v482_v29 = vadd.f32 %v1122_v40, %v467_v63  ;;  %v504_v32 = vunpack.c.l.bf16 %v503_v31 }
 0x1b7   : > { %656 = vmatprep.mubr.bf16.mxu0 %v1561_v55  ;;  %v481_v8 = vadd.f32 %v1122_v40, %v466_v30 }
 0x1b8   : > { %1173 = vmatpush3.bf16.msra.mxu1 %v1316_v17  ;;  %v509_v35 = vrot.slane %v504_v32, %v1850_v33  ;;  %v513_v36 = vrot.slane %v504_v32, %v512_v34 }
 0x1b9   : > { %v486_v9 = vpack.c.bf16 %v482_v29, %v481_v8 }
 0x1ba   : > { %v1854_v39 = vrot.slane %v509_v35, %v1850_v33  ;;  %v1857_v40 = vrot.slane %v513_v36, %v1850_v33 }
 0x1be   : > { %657 = vmatmul.mubr.bf16.gmra.mxu0 %v485_v62 }
 0x1bf   : > { %666 = vmatprep.mubr.bf16.mxu0 %v1561_v55  ;;  %v1317_v55 = vld [vmem:[#allocation8 + $0x58] sm:$0xff]  }
 0x1c0   : > { %1174 = vmatprep.subr.bf16.mxu1 %v1317_v55 }
 0x1c1   : > { %1175 = vmatpush3.bf16.msra.mxu1 %v1318_v18 }
 0x1c2   : > { %1176 = vmatprep.subr.bf16.mxu1 %v1319_v19 }
 0x1c5   : > { %1177 = vmatpush3.bf16.msra.mxu1 %v1320_v20 }
 0x1c6   : > { %667 = vmatmul.mubr.bf16.gmra.mxu0 %v486_v9  ;;  %1178 = vmatprep.subr.bf16.mxu1 %v1321_v23 }
 0x1c9   : > { %1179 = vmatpush3.bf16.msra.mxu1 %v1322_v24 }
 0x1ca   : > { %1180 = vmatprep.subr.bf16.mxu1 %v1323_v25 }
 0x1cd   : > { %1181 = vmatpush3.bf16.msra.mxu1 %v1324_v26 }
 0x26e   : > { %v638_v41 = vpop.f32.mrf.mxu0 }
 0x26f   : > { %v639_v42 = vadd.f32 %v638_v41, %v1854_v39 }
 0x270   : > { %v640_v43 = vpop.f32.mrf.mxu0 }
 0x271   : > { %v693_v44 = vmul.f32 0.70710677, %v639_v42  ;;  %v641_v14 = vadd.f32 %v640_v43, %v1857_v40  ;;  %v677_v25 = vmul.f32 0.5, %v639_v42 }
 0x272   : > { %v642_v45 = vpop.f32.mrf.mxu0 }
 0x273   : > { %v694_v46 = vmul.f32 0.70710677, %v641_v14  ;;  %v643_v47 = vadd.f32 %v642_v45, %v1854_v39  ;;  %1341 = verf.f32 %v693_v44  ;;  %v678_v26 = vmul.f32 0.5, %v641_v14 }
 0x274   : > { %v644_v48 = vpop.f32.mrf.mxu0 }
 0x275   : > { %v695_v49 = vmul.f32 0.70710677, %v643_v47  ;;  %v645_v50 = vadd.f32 %v644_v48, %v1857_v40  ;;  %1343 = verf.f32 %v694_v46  ;;  %v679_v20 = vmul.f32 0.5, %v643_v47 }
 0x276   : > { %v648_v21 = vpop.f32.mrf.mxu0 }
 0x277   : > { %1345 = verf.f32 %v695_v49  ;;  %v696_v51 = vmul.f32 0.70710677, %v645_v50  ;;  %v1864_v52 = vadd.f32 %v648_v21, %v1854_v39  ;;  %v680_v31 = vmul.f32 0.5, %v645_v50 }
 0x278   : > { %v650_v53 = vpop.f32.mrf.mxu0 }
 0x279   : > { %1347 = verf.f32 %v696_v51  ;;  %v1867_v54 = vadd.f32 %v650_v53, %v1857_v40  ;;  %v697_v56 = vmul.f32 0.70710677, %v1864_v52 }
 0x27a   : > { %v652_v57 = vpop.f32.mrf.mxu0 }
 0x27b   : > { %v698_v15 = vmul.f32 0.70710677, %v1867_v54  ;;  %v653_v22 = vadd.f32 %v652_v57, %v1854_v39 }
 0x27c   : > { %v654_v58 = vpop.f32.mrf.mxu0 }
 0x27d   : > { %1349 = verf.f32 %v698_v15  ;;  %v699_v59 = vmul.f32 0.70710677, %v653_v22  ;;  %v655_v60 = vadd.f32 %v654_v58, %v1857_v40  ;;  %v682_v58 = vmul.f32 0.5, %v1867_v54 }
 0x27e   : > { %1351 = verf.f32 %v697_v56  ;;  %v658_v61 = vpop.f32.mrf.mxu0 }
 0x27f   : > { %1353 = verf.f32 %v699_v59  ;;  %v700_v62 = vmul.f32 0.70710677, %v655_v60  ;;  %v1874_v63 = vadd.f32 %v658_v61, %v1854_v39  ;;  %v683_v59 = vmul.f32 0.5, %v653_v22 }
 0x280   : > { %v660_v30 = vpop.f32.mrf.mxu0  ;;  %v1342_v8 = vpop.eup %1341  ;;  %v684_v61 = vmul.f32 0.5, %v655_v60 }
 0x281   : > { %1355 = verf.f32 %v700_v62  ;;  %v701_v29 = vmul.f32 0.70710677, %v1874_v63  ;;  %v1878_v9 = vadd.f32 %v660_v30, %v1857_v40  ;;  %v725_v19 = vadd.f32 1.0, %v1342_v8 }
 0x282   : > { %v662_v10 = vpop.f32.mrf.mxu0  ;;  %v1344_v11 = vpop.eup %1343 }
 0x283   : > { %v1881_v12 = vadd.f32 %v662_v10, %v1854_v39  ;;  %v702_v38 = vmul.f32 0.70710677, %v1878_v9  ;;  %1357 = verf.f32 %v701_v29  ;;  %v726_v24 = vadd.f32 1.0, %v1344_v11 }
 0x284   : > { %v1346_v13 = vpop.eup %1345  ;;  %v664_v37 = vpop.f32.mrf.mxu0  ;;  %v741_v43 = vmul.f32 %v725_v19, %v677_v25  ;;  %v686_v19 = vmul.f32 0.5, %v1878_v9  ;;  %v685_v25 = vmul.f32 0.5, %v1874_v63 }
 0x285   : > { %v727_v16 = vadd.f32 1.0, %v1346_v13  ;;  %v703_v17 = vmul.f32 0.70710677, %v1881_v12  ;;  %v1886_v55 = vadd.f32 %v664_v37, %v1857_v40  ;;  %1359 = verf.f32 %v702_v38 }
 0x286   : > { %v1348_v18 = vpop.eup %1347  ;;  %v668_v23 = vpop.f32.mrf.mxu0  ;;  %v742_v45 = vmul.f32 %v726_v24, %v678_v26 }
 0x287   : > { %1361 = verf.f32 %v703_v17  ;;  %v704_v27 = vmul.f32 0.70710677, %v1886_v55  ;;  %v743_v28 = vmul.f32 %v727_v16, %v679_v20  ;;  %v1890_v32 = vadd.f32 %v668_v23, %v1854_v39 }
 0x288   : > { %v670_v34 = vpop.f32.mrf.mxu0  ;;  %v728_v35 = vadd.f32 1.0, %v1348_v18  ;;  %v688_v23 = vmul.f32 0.5, %v1886_v55 }
 0x289   : > { %1363 = verf.f32 %v704_v27  ;;  %v1893_v36 = vadd.f32 %v670_v34, %v1857_v40  ;;  %v705_v46 = vmul.f32 0.70710677, %v1890_v32  ;;  %v757_v51 = vpack.c.bf16 %v743_v28, %v741_v43 }
 0x28a   : > { %v1350_v41 = vpop.eup %1349  ;;  %v672_v44 = vpop.f32.mrf.mxu0  ;;  %v744_v42 = vmul.f32 %v728_v35, %v680_v31  ;;  %v689_v63 = vmul.f32 0.5, %v1890_v32 }
 0x28b   : > { %v1352_v14 = vpop.eup %1351  ;;  %v706_v47 = vmul.f32 0.70710677, %v1893_v36  ;;  %v673_v49 = vadd.f32 %v672_v44, %v1854_v39  ;;  %v730_v53 = vadd.f32 1.0, %v1350_v41  ;;  %v681_v39 = vmul.f32 0.5, %v1864_v52 }
 0x28c   : > { %v1354_v48 = vpop.eup %1353  ;;  %v674_v50 = vpop.f32.mrf.mxu0  ;;  %v758_v21 = vpack.c.bf16 %v744_v42, %v742_v45  ;;  %v729_v30 = vadd.f32 1.0, %v1352_v14  ;;  %v687_v52 = vmul.f32 0.5, %v1881_v12  ;;  %v690_v12 = vmul.f32 0.5, %v1893_v36  ;;  %v797_v36 = vld [vmem:[%s1998_s6] sm:$0x1] }
 0x28d   : > { %v731_v56 = vadd.f32 1.0, %v1354_v48  ;;  %1365 = verf.f32 %v706_v47  ;;  %v675_v57 = vadd.f32 %v674_v50, %v1857_v40  ;;  %v707_v62 = vmul.f32 0.70710677, %v673_v49 }
 0x28e   : > { %v1356_v15 = vpop.eup %1355  ;;  %931 = vmatprep.mubr.bf16.mxu1 %v758_v21  ;;  %1367 = verf.f32 %v705_v46  ;;  %v746_v10 = vmul.f32 %v730_v53, %v682_v58  ;;  %v745_v37 = vmul.f32 %v729_v30, %v681_v39  ;;  %v691_v14 = vmul.f32 0.5, %v673_v49 }
 0x28f   : > { %v732_v29 = vadd.f32 1.0, %v1356_v15  ;;  %v708_v8 = vmul.f32 0.70710677, %v675_v57  ;;  %932 = vmatmul.mubr.bf16.vlgmr.msra.gmra.mxu1 %v757_v51  ;;  %1369 = verf.f32 %v707_v62  ;;  %v747_v11 = vmul.f32 %v731_v56, %v683_v59 }
 0x290   : > { %v1358_v40 = vpop.eup %1357  ;;  %v692_v46 = vmul.f32 0.5, %v675_v57  ;;  %v798_v15 = vunpack.c.l.bf16 %v797_v36 }
 0x291   : > { %v748_v13 = vmul.f32 %v732_v29, %v684_v61  ;;  %1371 = verf.f32 %v708_v8  ;;  %v759_v17 = vpack.c.bf16 %v747_v11, %v745_v37  ;;  %v733_v20 = vadd.f32 1.0, %v1358_v40 }
 0x292   : > { %v1360_v38 = vpop.eup %1359  ;;  %v802_v57 = vrot.slane %v798_v15, %v1850_v33 }
 0x293   : > { %v760_v54 = vpack.c.bf16 %v748_v13, %v746_v10  ;;  %v734_v60 = vadd.f32 1.0, %v1360_v38  ;;  %v749_v34 = vmul.f32 %v733_v20, %v685_v25 }
 0x294   : > { %v1362_v22 = vpop.eup %1361 }
 0x295   : > { %v735_v16 = vadd.f32 1.0, %v1362_v22  ;;  %939 = vmatprep.mubr.bf16.mxu1 %v760_v54  ;;  %v750_v26 = vmul.f32 %v734_v60, %v686_v19 }
 0x296   : > { %v1364_v18 = vpop.eup %1363 }
 0x297   : > { %v736_v24 = vadd.f32 1.0, %v1364_v18  ;;  %940 = vmatmul.mubr.bf16.gmra.mxu1 %v759_v17  ;;  %v751_v27 = vmul.f32 %v735_v16, %v687_v52 }
 0x299   : > { %v752_v28 = vmul.f32 %v736_v24, %v688_v23  ;;  %v761_v9 = vpack.c.bf16 %v751_v27, %v749_v34 }
 0x29a   : > { %v1366_v31 = vpop.eup %1365 }
 0x29b   : > { %v762_v35 = vpack.c.bf16 %v752_v28, %v750_v26  ;;  %v1368_v41 = vpop.eup %1367  ;;  %v738_v44 = vadd.f32 1.0, %v1366_v31 }
 0x29c   : > { %v1370_v43 = vpop.eup %1369  ;;  %v737_v55 = vadd.f32 1.0, %v1368_v41 }
 0x29d   : > { %947 = vmatprep.mubr.bf16.mxu1 %v762_v35  ;;  %v739_v42 = vadd.f32 1.0, %v1370_v43  ;;  %v754_v48 = vmul.f32 %v738_v44, %v690_v12 }
 0x29e   : > { %v1372_v45 = vpop.eup %1371  ;;  %v753_v51 = vmul.f32 %v737_v55, %v689_v63 }
 0x29f   : > { %v740_v47 = vadd.f32 1.0, %v1372_v45  ;;  %948 = vmatmul.mubr.bf16.gmra.mxu1 %v761_v9  ;;  %v755_v50 = vmul.f32 %v739_v42, %v691_v14 }
 0x2a1   : > { %v756_v21 = vmul.f32 %v740_v47, %v692_v46  ;;  %v763_v56 = vpack.c.bf16 %v755_v50, %v753_v51 }
 0x2a3   : > { %v764_v53 = vpack.c.bf16 %v756_v21, %v754_v48 }
 0x2a5   : > { %955 = vmatprep.mubr.bf16.mxu1 %v764_v53 }
 0x2a7   : > { %956 = vmatmul.mubr.bf16.gmra.mxu1 %v763_v56 }
 0x34f   : > { %v1182_v49 = vpop.f32.mrf.mxu1 }
 0x351   : > { %v1183_v58 = vpop.f32.mrf.mxu1 }
 0x352   : > { %v1184_v59 = vadd.f32 %v1183_v58, %v1182_v49 }
 0x353   : > { %v1185_v32 = vpop.f32.mrf.mxu1 }
 0x354   : > { %v934_v61 = vadd.f32 %v1184_v59, %v802_v57 }
 0x355   : > { %v1186_v62 = vpop.f32.mrf.mxu1 }
 0x356   : > { %v964_v30 = vadd.f32 %v934_v61, %v1768_v0  ;;  %v1187_v29 = vadd.f32 %v1186_v62, %v1185_v32 }
 0x357   : > { %v1188_v8 = vpop.f32.mrf.mxu1 }
 0x358   : > { %972 = vst [vmem:[%s1914_s22] sm:$0xff] %v964_v30  ;;  %v937_v39 = vadd.f32 %v1187_v29, %v802_v57 }
 0x359   : > { %v1189_v10 = vpop.f32.mrf.mxu1 }
 0x35a   : > { %v965_v33 = vadd.f32 %v937_v39, %v1774_v2  ;;  %v1190_v11 = vadd.f32 %v1189_v10, %v1188_v8 }
 0x35b   : > { %v1191_v13 = vpop.f32.mrf.mxu1 }
 0x35c   : > { %973 = vst [vmem:[%s1914_s22 + $0x8] sm:$0xff] %v965_v33  ;;  %v942_v40 = vadd.f32 %v1190_v11, %v802_v57 }
 0x35d   : > { %v1192_v38 = vpop.f32.mrf.mxu1 }
 0x35e   : > { %v966_v0 = vadd.f32 %v942_v40, %v1770_v1  ;;  %v1193_v37 = vadd.f32 %v1192_v38, %v1191_v13 }
 0x35f   : > { %v1194_v54 = vpop.f32.mrf.mxu1 }
 0x360   : > { %974 = vst [vmem:[%s1914_s22 + $0x10] sm:$0xff] %v966_v0  ;;  %v945_v22 = vadd.f32 %v1193_v37, %v802_v57 }
 0x361   : > { %v1195_v60 = vpop.f32.mrf.mxu1 }
 0x362   : > { %v967_v16 = vadd.f32 %v945_v22, %v1776_v3  ;;  %v1196_v17 = vadd.f32 %v1195_v60, %v1194_v54 }
 0x363   : > { %v1197_v18 = vpop.f32.mrf.mxu1 }
 0x364   : > { %975 = vst [vmem:[%s1914_s22 + $0x18] sm:$0xff] %v967_v16  ;;  %v950_v2 = vadd.f32 %v1196_v17, %v802_v57 }
 0x365   : > { %v1198_v19 = vpop.f32.mrf.mxu1 }
 0x366   : > { %v968_v20 = vadd.f32 %v950_v2, %v1778_v4  ;;  %v1199_v52 = vadd.f32 %v1198_v19, %v1197_v18 }
 0x367   : > { %v1200_v23 = vpop.f32.mrf.mxu1 }
 0x368   : > { %976 = vst [vmem:[%s1914_s22 + $0x20] sm:$0xff] %v968_v20  ;;  %v953_v1 = vadd.f32 %v1199_v52, %v802_v57 }
 0x369   : > { %v1201_v24 = vpop.f32.mrf.mxu1 }
 0x36a   : > { %v969_v25 = vadd.f32 %v953_v1, %v1780_v5  ;;  %v1202_v26 = vadd.f32 %v1201_v24, %v1200_v23 }
 0x36b   : > { %v1203_v27 = vpop.f32.mrf.mxu1 }
 0x36c   : > { %977 = vst [vmem:[%s1914_s22 + $0x28] sm:$0xff] %v969_v25  ;;  %v958_v3 = vadd.f32 %v1202_v26, %v802_v57 }
 0x36d   : > { %v1204_v28 = vpop.f32.mrf.mxu1 }
 0x36e   : > { %v970_v31 = vadd.f32 %v958_v3, %v1784_v6  ;;  %v1205_v34 = vadd.f32 %v1204_v28, %v1203_v27 }
 0x370   : > { %978 = vst [vmem:[%s1914_s22 + $0x30] sm:$0xff] %v970_v31  ;;  %v961_v35 = vadd.f32 %v1205_v34, %v802_v57  ;;  %987 = sbr.rel (!%p2020_p12) target bundleno = 912 (0x390), region = 68 }
 0x372   : > { %v971_v4 = vadd.f32 %v961_v35, %v1786_v7 }
 0x374   : > { %979 = vst [vmem:[%s1914_s22 + $0x38] sm:$0xff] %v971_v4 }
 0x375   : > { %s2029_s8 = smov (!%p990_p5, %s989_s8), 8 }
 0x376   : > { %s1935_s2 = sshll.u32 %s2029_s8, 7 }
 0x377   : > { %s994_s3 = ssub.s32 1024, %s1935_s2 }
 0x378   : > { %995 = vsyncadd %s981_s11, %s994_s3  ;;  %p1158_p13 = scmp.ne.s32.totalorder %s1935_s2, 0  ;;  %s1165_s13 = sshll.u32 %s1626_s28, 10 }
 0x379   : > { %s1945_s20 = scalar_lea.hbm %s1999_s7, %s1165_s13  ;;  %s1000_s12 = sshll.u32 %s1914_s22, 4  ;;  %s1948_s12 = int_to_ptr.vmem [resolvable:$true] %s1000_s12 }
 0x37a   : > { %s1477_s15 = scalar_lea.vmem %s1948_s12, %s1935_s2  ;;  %s1562_s23 = smov [#allocation10]  }
 0x37b   : > { %p1478_p8 = scmp.ne.s32.totalorder %s1948_s12, %s1477_s15  ;;  %s1481_s18 = sshll.u32 %s1562_s23, 4  ;;  %s1482_s18 = int_to_ptr.vmem [resolvable:$false] %s1481_s18 }
 0x37c   : > { %s1483_s28 = scalar_lea.vmem %s1482_s18, 2048  ;;  %p1484_p2 = scmp.lt.s32.totalorder %s1948_s12, %s1482_s18 }
 0x37d   : > { %p1479_p9 = pnand %p1478_p8, %p1158_p13  ;;  %p1485_p1 = scmp.lt.s32.totalorder %s1483_s28, %s1477_s15 }
 0x37f   : > { %p1480_p10 = pneg %p1479_p9  ;;  %p1486_p3 = por %p1485_p1, %p1484_p2 }
 0x381   : > { %p1487_p7 = pnand %p1486_p3, %p1480_p10 }
 0x383   : > { %1490 = shalt.err (!%p1487_p7)
}
 0x384   : > { %s1491_s19 = scalar_lea.hbm %s1945_s20, %s1935_s2  ;;  %s1495_s29 = scalar_lea.hbm %s1999_s7, 2176 }
 0x385   : > { %p1492_p0 = scmp.ne.s32.totalorder %s1945_s20, %s1491_s19  ;;  %p1496_p6 = scmp.lt.s32.totalorder %s1945_s20, %s1999_s7 }
 0x386   : > { %p1497_p12 = scmp.lt.s32.totalorder %s1495_s29, %s1491_s19 }
 0x387   : > { %p1493_p11 = pnand %p1492_p0, %p1158_p13 }
 0x388   : > { %p1498_p5 = por %p1497_p12, %p1496_p6 }
 0x389   : > { %p1494_p4 = pneg %p1493_p11 }
 0x38b   : > { %p1499_p8 = pnand %p1498_p5, %p1494_p4 }
 0x38d   : > { %1502 = shalt.err (!%p1499_p8)
}
 0x38e   : > { %s1563_s13 = smov 128   ;;  %s1564_s21 = smov 8  }
 0x38f   : > { %1006 = dma.vmem_to_hbm [thread:$0]  (%p1158_p13), %s1948_s12, %s1935_s2, %s1945_s20, %s981_s11, %s1563_s13, %s1563_s13, %s1564_s21  }
 0x390 PF: > { %p1240_p9 = scmp.ge.s32.totalorder %s1549_s27, 2  ;;  %s1015_s17 = sand.u32 1, %s1537_s24  }
 0x391   : > { %p2021_p10 = scmp.ne.s32.totalorder %s2008_s14, 0  ;;  %s1016_s15 = scalar_lea.sflag [#allocation4], %s1015_s17 }
 0x393   : > { %p1231_p2 = pnand %p1240_p9, %p2021_p10 }
 0x395   : > { %p1232_p1 = pneg %p1231_p2 }
 0x397   : > { %1532 = dma.done.wait (%p1232_p1), %s1016_s15, 1024  }
 0x398   : > { %1534 = vsyncadd (%p1232_p1), %s1016_s15, 4294966272  ;;  %p22_p3 = scmp.ge.s32.totalorder %s1630_s30, 5   ;;  %s2022_s24 = smov %s1541_s25 }
 0x399   : > { %s2023_s25 = smov %s1545_s26  ;;  %s2024_s26 = smov %s1642_s10 }
 0x39a   : > { %s2025_s27 = smov %s1630_s30  ;;  %24 = sbr.rel (!%p22_p3) target bundleno = 10 (0xa), region = 105 }
 0x39f   :  { %1021 = vsyncpa [#allocation3], 1 }
 0x3a0   :  { %1023 = vsyncpa [#allocation3 + $0x1], 1 }
 0x3a1   :  { %1024 = vsyncpa [#allocation6], 1 }
 0x3a2   :  { %1025 = vsyncpa [#allocation9], 1 }
 0x3a3   :  { %1026 = vsyncpa [#allocation4], 1 }
 0x3a4   :  { %1028 = vsyncpa [#allocation4 + $0x1], 1 }

</bundles_post_ra>
